<compile_context>
chip_gen: v6e
topology: v6e:2x2x1
jax: 0.10.0
libtpu: 0.0.40
codegen_flags: <defaults>
</compile_context>

<pallas_src>
import numpy as np

import jax
import jax.numpy as jnp
from jax.experimental import pallas as pl
from jax.experimental.pallas import tpu as pltpu

LEAKY_SLOPE = 0.2
BN_EPS = 1e-5


# ----------------------------------------------------------------------------
# static layout helpers (host side, numpy)
# ----------------------------------------------------------------------------
def _round_up(x, m):
    return ((x + m - 1) // m) * m


def _level_geometry(H, W, pads):
    """Per-sample gapped-row layout for an HxW map feeding convs with the given
    paddings.  Lanes = flattened spatial; G zero gap columns per row provide
    horizontal padding, T zero halo positions at both ends absorb every tap
    shift, and the total lane length Lp is padded to a multiple of 128."""
    G = max(pads)
    width = W + G
    seg = H * width
    T = max(p * width + p for p in pads)          # >= largest |tap shift|
    Lp = _round_up(T + seg + T, 128)
    return dict(H=H, W=W, G=G, width=width, seg=seg, T=T, Lp=Lp)


def _pos(g, h, w):
    return g['T'] + h * g['width'] + w


def _mask(g):
    """(1, Lp) mask: 1 on real pixel lanes, 0 on gap / halo lanes."""
    m = np.zeros((1, g['Lp']), np.float32)
    for h in range(g['H']):
        r = _pos(g, h, 0)
        m[0, r:r + g['W']] = 1.0
    return m


def _scatter0(g):
    """(H*W, Lp) 0/1 matrix: dense (h, w) index -> gapped lane position."""
    H, W = g['H'], g['W']
    S = np.zeros((H * W, g['Lp']), np.float32)
    for h in range(H):
        for w in range(W):
            S[h * W + w, _pos(g, h, w)] = 1.0
    return S


def _upsample_map(gs, gd):
    """(Lp_src, Lp_dst) 0/1 lane-remap: nearest-neighbour 2x upsample, shared
    across batch samples and channels (also re-zeroes all dst gap lanes)."""
    U = np.zeros((gs['Lp'], gd['Lp']), np.float32)
    for oh in range(gd['H']):
        for ow in range(gd['W']):
            U[_pos(gs, oh // 2, ow // 2), _pos(gd, oh, ow)] = 1.0
    return U


def _tap_shifts(g, K, pad):
    return [(kh - pad) * g['width'] + (kw - pad)
            for kh in range(K) for kw in range(K)]


# ----------------------------------------------------------------------------
# parameter folding (wrapper side)
# ----------------------------------------------------------------------------
def _bn_fold(gamma, beta, mean, var):
    scale = gamma / jnp.sqrt(var + BN_EPS)
    return scale, beta - mean * scale


def _merge_taps(w, scale=None):
    """(KH, KW, Cin, Cout) [+ folded BN scale] -> merged (Cout, KH*KW*Cin)."""
    KH, KW, Cin, Cout = w.shape
    wm = (w.reshape(KH * KW, Cin, Cout).transpose(2, 0, 1)
          .reshape(Cout, KH * KW * Cin))
    if scale is not None:
        wm = wm * scale[:, None]
    return wm


# ----------------------------------------------------------------------------
# fused decoder (single pallas_call, grid over batch)
# ----------------------------------------------------------------------------
def make_decoder_fn(params, N):
    """Build a jitted z -> (N, cdim, H, W) decoder running as ONE Pallas kernel
    (plus a tiny fc matmul in the wrapper)."""
    C0, H0, W0 = params['conv_input_size']
    HW0 = H0 * W0
    cdim = params['predict_w'].shape[-1]
    blocks = params['blocks']
    pred_k = params['predict_w'].shape[0]
    pred_pad = pred_k // 2

    # spatial size seen by each residual block
    sizes = []
    hh, ww = H0, W0
    for blk in blocks:
        sizes.append((hh, ww))
        if blk['upsample']:
            hh, ww = 2 * hh, 2 * ww

    geoms = []
    for i, (gh, gw) in enumerate(sizes):
        pads = [1] + ([pred_pad] if i == len(sizes) - 1 else [])
        geoms.append(_level_geometry(gh, gw, pads))
    g_last = geoms[-1]

    # ---- flat operand list + static plan ------------------------------------
    operands = []

    def add(x):
        operands.append(jnp.asarray(x, jnp.float32))
        return len(operands) - 1

    i_s0 = add(_scatter0(geoms[0]))                   # (HW0, Lp0)

    block_plan = []
    for bi, blk in enumerate(blocks):
        g = geoms[bi]
        s1, o1 = _bn_fold(blk['bn1_gamma'], blk['bn1_beta'],
                          blk['bn1_mean'], blk['bn1_var'])
        s2, o2 = _bn_fold(blk['bn2_gamma'], blk['bn2_beta'],
                          blk['bn2_mean'], blk['bn2_var'])
        block_plan.append(dict(
            shifts=_tap_shifts(g, 3, 1),
            w1=add(_merge_taps(blk['w1'], s1)), b1=add(o1.reshape(-1, 1)),
            w2=add(_merge_taps(blk['w2'], s2)), b2=add(o2.reshape(-1, 1)),
            wexp=None if blk['w_expand'] is None else add(blk['w_expand'][0, 0].T),
            mask=add(_mask(g)),
            up=None if not blk['upsample']
               else add(_upsample_map(g, geoms[bi + 1])),
        ))

    pred_plan = dict(
        shifts=_tap_shifts(g_last, pred_k, pred_pad),
        w=add(_merge_taps(params['predict_w'])),
        b=add(params['predict_b'].reshape(-1, 1)),
    )

    # ---- the kernel (one grid step per batch sample) -------------------------
    def leaky(x):
        return jnp.where(x >= 0, x, LEAKY_SLOPE * x)

    def conv(x, wm, bias, shifts):
        """Stride-1 'same' conv in the gapped lane layout: each tap is a static
        lane rotation (XLU), all taps stacked along sublanes and contracted in
        one deep-K MXU dot; the zero gaps/halos supply the padding."""
        Lp = x.shape[1]
        pieces = []
        for s in shifts:
            sh = (-s) % Lp
            pieces.append(x if sh == 0 else pltpu.roll(x, shift=sh, axis=1))
        xs = jnp.concatenate(pieces, axis=0)            # (K*Cin, Lp)
        return jnp.dot(wm, xs, preferred_element_type=jnp.float32) + bias

    def kernel(*refs):
        a_ref, o_ref = refs[0], refs[-1]
        c = refs[1:-1]

        # scatter the (C0, H0*W0) fc activation into the gapped lane layout
        x = jnp.dot(a_ref[0], c[i_s0][...], preferred_element_type=jnp.float32)

        for bp in block_plan:
            if bp['wexp'] is None:
                identity = x
            else:                                   # conv_expand: 1x1, no bias/BN
                identity = jnp.dot(c[bp['wexp']][...], x,
                                   preferred_element_type=jnp.float32)
            mask = c[bp['mask']][...]
            h = leaky(conv(x, c[bp['w1']][...], c[bp['b1']][...], bp['shifts']))
            h = h * mask                            # re-zero layout gaps
            y = conv(h, c[bp['w2']][...], c[bp['b2']][...], bp['shifts'])
            x = leaky(y + identity)                 # LeakyReLU after residual add
            if bp['up'] is not None:                # nearest-2x upsample (lane remap)
                x = jnp.dot(x, c[bp['up']][...],
                            preferred_element_type=jnp.float32)
            else:
                x = x * mask                        # clean gaps for the 5x5 conv

        y = conv(x, c[pred_plan['w']][...], c[pred_plan['b']][...],
                 pred_plan['shifts'])
        o_ref[0, :, :] = y                          # (cdim, Lp_last), lane-dense

    Lp_last = g_last['Lp']
    in_specs = ([pl.BlockSpec((1, C0, HW0), lambda n: (n, 0, 0))] +
                [pl.BlockSpec(op.shape, lambda n: (0, 0)) for op in operands])
    out_spec = pl.BlockSpec((1, cdim, Lp_last), lambda n: (n, 0, 0))

    decode = pl.pallas_call(
        kernel,
        grid=(N,),
        in_specs=in_specs,
        out_specs=out_spec,
        out_shape=jax.ShapeDtypeStruct((N, cdim, Lp_last), jnp.float32),
        compiler_params=pltpu.CompilerParams(
            dimension_semantics=("parallel",)),     # v7x: samples across 2 TCs
    )

    fc_w, fc_b = params['fc_w'], params['fc_b']
    T, seg, width = g_last['T'], g_last['seg'], g_last['width']
    HL, WL = g_last['H'], g_last['W']

    @jax.jit
    def forward(z):
        z = z.reshape(N, -1).astype(jnp.float32)
        # tiny fc + ReLU in the wrapper (no kron operand, one fused XLA op)
        a = jnp.maximum(
            jnp.dot(z, fc_w, precision=jax.lax.Precision.HIGHEST) + fc_b, 0.0)
        a = a.reshape(N, C0, HW0)                    # torch .view(N, C0, H0, W0)
        raw = decode(a, *operands)                   # (N, cdim, Lp_last)
        img = raw[:, :, T:T + seg].reshape(N, cdim, HL, width)[:, :, :, :WL]
        return img                                   # NCHW, no transpose needed

    return forward


# ----------------------------------------------------------------------------
# pure-JAX reference (exact PyTorch Decoder semantics, eval-mode BN)
# ----------------------------------------------------------------------------
def decoder_reference(params, z):
    N = z.shape[0]
    hp = jax.lax.Precision.HIGHEST
    y = jnp.dot(z, params['fc_w'], precision=hp) + params['fc_b']
    y = jnp.maximum(y, 0.0)
    C0, H0, W0 = params['conv_input_size']
    y = y.reshape(N, C0, H0, W0)

    def conv(x, w, pad):
        return jax.lax.conv_general_dilated(
            x, w, window_strides=(1, 1), padding=[(pad, pad), (pad, pad)],
            dimension_numbers=('NCHW', 'HWIO', 'NCHW'), precision=hp)

    def bn(x, g, b, m, v):
        inv = 1.0 / jnp.sqrt(v + BN_EPS)
        return ((x - m[None, :, None, None]) * (g * inv)[None, :, None, None]
                + b[None, :, None, None])

    def lrelu(x):
        return jnp.where(x >= 0, x, LEAKY_SLOPE * x)

    for blk in params['blocks']:
        identity = y if blk['w_expand'] is None else conv(y, blk['w_expand'], 0)
        h = lrelu(bn(conv(y, blk['w1'], 1), blk['bn1_gamma'], blk['bn1_beta'],
                     blk['bn1_mean'], blk['bn1_var']))
        o = bn(conv(h, blk['w2'], 1), blk['bn2_gamma'], blk['bn2_beta'],
               blk['bn2_mean'], blk['bn2_var'])
        y = lrelu(o + identity)
        if blk['upsample']:
            y = jnp.repeat(jnp.repeat(y, 2, axis=2), 2, axis=3)
    y = conv(y, params['predict_w'], params['predict_w'].shape[0] // 2)
    return y + params['predict_b'][None, :, None, None]


# ----------------------------------------------------------------------------
# deterministic parameters
# ----------------------------------------------------------------------------
def init_params(key, cdim=3, zdim=32, channels=(8, 16), conv_input_size=(16, 4, 4)):
    keys = iter(jax.random.split(key, 128))

    def nrm(shape, s=0.1):
        return (s * jax.random.normal(next(keys), shape)).astype(jnp.float32)

    def res_block_params(inc, outc, upsample):
        midc = outc  # scale=1.0
        return {
            'w_expand': nrm((1, 1, inc, outc)) if inc != outc else None,
            'w1': nrm((3, 3, inc, midc)),
            'bn1_gamma': 1.0 + nrm((midc,)),
            'bn1_beta': nrm((midc,)),
            'bn1_mean': nrm((midc,)),
            'bn1_var': 1.0 + jnp.abs(nrm((midc,))),
            'w2': nrm((3, 3, midc, outc)),
            'bn2_gamma': 1.0 + nrm((outc,)),
            'bn2_beta': nrm((outc,)),
            'bn2_mean': nrm((outc,)),
            'bn2_var': 1.0 + jnp.abs(nrm((outc,))),
            'upsample': upsample,
        }

    cc = channels[-1]
    num_fc = conv_input_size[0] * conv_input_size[1] * conv_input_size[2]
    params = {
        'fc_w': nrm((zdim, num_fc)),
        'fc_b': nrm((num_fc,)),
        'conv_input_size': conv_input_size,
        'blocks': [],
    }
    for ch in channels[::-1]:
        params['blocks'].append(res_block_params(cc, ch, upsample=True))
        cc = ch
    params['blocks'].append(res_block_params(cc, cc, upsample=False))
    params['predict_w'] = nrm((5, 5, cc, cdim))
    params['predict_b'] = nrm((cdim,))
    return params


if __name__ == "__main__":
    key = jax.random.PRNGKey(0)
    pkey, zkey = jax.random.split(key)

    # Small config: cdim=3, zdim=32, channels=(8, 16), conv_input_size=(16, 4, 4)
    # -> two 2x upsamples: 4x4 -> 16x16 output image.
    params = init_params(pkey, cdim=3, zdim=32,
                         channels=(8, 16), conv_input_size=(16, 4, 4))

    N, zdim = 2, 32
    z = jax.random.normal(zkey, (N, zdim), dtype=jnp.float32)

    decoder = make_decoder_fn(params, N)
    out = jax.block_until_ready(decoder(z))
    assert out.shape == (N, 3, 16, 16), out.shape
    assert bool(jnp.all(jnp.isfinite(out)))

    ref = decoder_reference(params, z)
    err = float(jnp.max(jnp.abs(out - ref)))
    assert err < 2e-2, f"kernel/reference mismatch: max abs err = {err}"
    print("KERNEL_OK")
</pallas_src>

<mosaic_0001>
module attributes {stable_mosaic.version = 11 : i64} {
  func.func @kernel(%arg0: i32, %arg1: memref<1x16x16xf32, #tpu.memory_space<vmem>>, %arg2: memref<16x128xf32, #tpu.memory_space<vmem>>, %arg3: memref<16x144xf32, #tpu.memory_space<vmem>>, %arg4: memref<16x1xf32, #tpu.memory_space<vmem>>, %arg5: memref<16x144xf32, #tpu.memory_space<vmem>>, %arg6: memref<16x1xf32, #tpu.memory_space<vmem>>, %arg7: memref<1x128xf32, #tpu.memory_space<vmem>>, %arg8: memref<128x128xf32, #tpu.memory_space<vmem>>, %arg9: memref<8x144xf32, #tpu.memory_space<vmem>>, %arg10: memref<8x1xf32, #tpu.memory_space<vmem>>, %arg11: memref<8x72xf32, #tpu.memory_space<vmem>>, %arg12: memref<8x1xf32, #tpu.memory_space<vmem>>, %arg13: memref<8x16xf32, #tpu.memory_space<vmem>>, %arg14: memref<1x128xf32, #tpu.memory_space<vmem>>, %arg15: memref<128x384xf32, #tpu.memory_space<vmem>>, %arg16: memref<8x72xf32, #tpu.memory_space<vmem>>, %arg17: memref<8x1xf32, #tpu.memory_space<vmem>>, %arg18: memref<8x72xf32, #tpu.memory_space<vmem>>, %arg19: memref<8x1xf32, #tpu.memory_space<vmem>>, %arg20: memref<1x384xf32, #tpu.memory_space<vmem>>, %arg21: memref<3x200xf32, #tpu.memory_space<vmem>>, %arg22: memref<3x1xf32, #tpu.memory_space<vmem>>, %arg23: memref<1x3x384xf32, #tpu.memory_space<vmem>>) attributes {dimension_semantics = [#tpu.dimension_semantics<parallel>], iteration_bounds = array<i64: 2>, scalar_prefetch = 0 : i64, scratch_operands = 0 : i64, tpu.core_type = #tpu.core_type<tc>, window_params = [{transform_indices = @transform_0, window_bounds = array<i64: 1, 16, 16>}, {pipeline_mode = #tpu.pipeline_mode<synchronous>, transform_indices = @transform_1, window_bounds = array<i64: 16, 128>}, {pipeline_mode = #tpu.pipeline_mode<synchronous>, transform_indices = @transform_2, window_bounds = array<i64: 16, 144>}, {pipeline_mode = #tpu.pipeline_mode<synchronous>, transform_indices = @transform_3, window_bounds = array<i64: 16, 1>}, {pipeline_mode = #tpu.pipeline_mode<synchronous>, transform_indices = @transform_4, window_bounds = array<i64: 16, 144>}, {pipeline_mode = #tpu.pipeline_mode<synchronous>, transform_indices = @transform_5, window_bounds = array<i64: 16, 1>}, {pipeline_mode = #tpu.pipeline_mode<synchronous>, transform_indices = @transform_6, window_bounds = array<i64: 1, 128>}, {pipeline_mode = #tpu.pipeline_mode<synchronous>, transform_indices = @transform_7, window_bounds = array<i64: 128, 128>}, {pipeline_mode = #tpu.pipeline_mode<synchronous>, transform_indices = @transform_8, window_bounds = array<i64: 8, 144>}, {pipeline_mode = #tpu.pipeline_mode<synchronous>, transform_indices = @transform_9, window_bounds = array<i64: 8, 1>}, {pipeline_mode = #tpu.pipeline_mode<synchronous>, transform_indices = @transform_10, window_bounds = array<i64: 8, 72>}, {pipeline_mode = #tpu.pipeline_mode<synchronous>, transform_indices = @transform_11, window_bounds = array<i64: 8, 1>}, {pipeline_mode = #tpu.pipeline_mode<synchronous>, transform_indices = @transform_12, window_bounds = array<i64: 8, 16>}, {pipeline_mode = #tpu.pipeline_mode<synchronous>, transform_indices = @transform_13, window_bounds = array<i64: 1, 128>}, {pipeline_mode = #tpu.pipeline_mode<synchronous>, transform_indices = @transform_14, window_bounds = array<i64: 128, 384>}, {pipeline_mode = #tpu.pipeline_mode<synchronous>, transform_indices = @transform_15, window_bounds = array<i64: 8, 72>}, {pipeline_mode = #tpu.pipeline_mode<synchronous>, transform_indices = @transform_16, window_bounds = array<i64: 8, 1>}, {pipeline_mode = #tpu.pipeline_mode<synchronous>, transform_indices = @transform_17, window_bounds = array<i64: 8, 72>}, {pipeline_mode = #tpu.pipeline_mode<synchronous>, transform_indices = @transform_18, window_bounds = array<i64: 8, 1>}, {pipeline_mode = #tpu.pipeline_mode<synchronous>, transform_indices = @transform_19, window_bounds = array<i64: 1, 384>}, {pipeline_mode = #tpu.pipeline_mode<synchronous>, transform_indices = @transform_20, window_bounds = array<i64: 3, 200>}, {pipeline_mode = #tpu.pipeline_mode<synchronous>, transform_indices = @transform_21, window_bounds = array<i64: 3, 1>}, {transform_indices = @transform_22, window_bounds = array<i64: 1, 3, 384>}]} {
    %c0 = arith.constant 0 : index
    %c0_0 = arith.constant 0 : index
    %c0_1 = arith.constant 0 : index
    %0 = vector.load %arg1[%c0, %c0_0, %c0_1] : memref<1x16x16xf32, #tpu.memory_space<vmem>>, vector<1x16x16xf32>
    %1 = vector.shape_cast %0 : vector<1x16x16xf32> to vector<16x16xf32>
    %c0_2 = arith.constant 0 : index
    %c0_3 = arith.constant 0 : index
    %2 = vector.load %arg2[%c0_2, %c0_3] : memref<16x128xf32, #tpu.memory_space<vmem>>, vector<16x128xf32>
    %cst = arith.constant dense<0.000000e+00> : vector<16x128xf32>
    %3 = tpu.matmul %1, %2, %cst {dimension_numbers = #tpu.dot_dimension_numbers<[1], [0], [0], [1], [0, 0, 1, 1], [], []>} : vector<16x16xf32>, vector<16x128xf32>, vector<16x128xf32> -> vector<16x128xf32>
    %c0_4 = arith.constant 0 : index
    %c0_5 = arith.constant 0 : index
    %4 = vector.load %arg7[%c0_4, %c0_5] : memref<1x128xf32, #tpu.memory_space<vmem>>, vector<1x128xf32>
    %c0_6 = arith.constant 0 : index
    %c0_7 = arith.constant 0 : index
    %5 = vector.load %arg3[%c0_6, %c0_7] : memref<16x144xf32, #tpu.memory_space<vmem>>, vector<16x144xf32>
    %c0_8 = arith.constant 0 : index
    %c0_9 = arith.constant 0 : index
    %6 = vector.load %arg4[%c0_8, %c0_9] : memref<16x1xf32, #tpu.memory_space<vmem>>, vector<16x1xf32>
    %c6_i32 = arith.constant 6 : i32
    %7 = tpu.dynamic_rotate %3 by %c6_i32 dim 1 : vector<16x128xf32>, i32 -> vector<16x128xf32>
    %c5_i32 = arith.constant 5 : i32
    %8 = tpu.dynamic_rotate %3 by %c5_i32 dim 1 : vector<16x128xf32>, i32 -> vector<16x128xf32>
    %c4_i32 = arith.constant 4 : i32
    %9 = tpu.dynamic_rotate %3 by %c4_i32 dim 1 : vector<16x128xf32>, i32 -> vector<16x128xf32>
    %c1_i32 = arith.constant 1 : i32
    %10 = tpu.dynamic_rotate %3 by %c1_i32 dim 1 : vector<16x128xf32>, i32 -> vector<16x128xf32>
    %c127_i32 = arith.constant 127 : i32
    %11 = tpu.dynamic_rotate %3 by %c127_i32 dim 1 : vector<16x128xf32>, i32 -> vector<16x128xf32>
    %c124_i32 = arith.constant 124 : i32
    %12 = tpu.dynamic_rotate %3 by %c124_i32 dim 1 : vector<16x128xf32>, i32 -> vector<16x128xf32>
    %c123_i32 = arith.constant 123 : i32
    %13 = tpu.dynamic_rotate %3 by %c123_i32 dim 1 : vector<16x128xf32>, i32 -> vector<16x128xf32>
    %c122_i32 = arith.constant 122 : i32
    %14 = tpu.dynamic_rotate %3 by %c122_i32 dim 1 : vector<16x128xf32>, i32 -> vector<16x128xf32>
    %15 = tpu.concatenate %7, %8, %9, %10, %3, %11, %12, %13, %14 in 0 : vector<16x128xf32>, vector<16x128xf32>, vector<16x128xf32>, vector<16x128xf32>, vector<16x128xf32>, vector<16x128xf32>, vector<16x128xf32>, vector<16x128xf32>, vector<16x128xf32> -> vector<144x128xf32>
    %cst_10 = arith.constant dense<0.000000e+00> : vector<16x128xf32>
    %16 = tpu.matmul %5, %15, %cst_10 {dimension_numbers = #tpu.dot_dimension_numbers<[1], [0], [0], [1], [0, 0, 1, 1], [], []>} : vector<16x144xf32>, vector<144x128xf32>, vector<16x128xf32> -> vector<16x128xf32>
    %17 = vector.broadcast %6 : vector<16x1xf32> to vector<16x128xf32>
    %18 = arith.addf %16, %17 : vector<16x128xf32>
    %cst_11 = arith.constant 0.000000e+00 : f32
    %19 = vector.broadcast %cst_11 : f32 to vector<16x128xf32>
    %20 = arith.cmpf oge, %18, %19 : vector<16x128xf32>
    %cst_12 = arith.constant 2.000000e-01 : f32
    %21 = vector.broadcast %cst_12 : f32 to vector<16x128xf32>
    %22 = arith.mulf %21, %18 : vector<16x128xf32>
    %23 = arith.select %20, %18, %22 : vector<16x128xi1>, vector<16x128xf32>
    %24 = vector.broadcast %4 : vector<1x128xf32> to vector<16x128xf32>
    %25 = arith.mulf %23, %24 : vector<16x128xf32>
    %c0_13 = arith.constant 0 : index
    %c0_14 = arith.constant 0 : index
    %26 = vector.load %arg5[%c0_13, %c0_14] : memref<16x144xf32, #tpu.memory_space<vmem>>, vector<16x144xf32>
    %c0_15 = arith.constant 0 : index
    %c0_16 = arith.constant 0 : index
    %27 = vector.load %arg6[%c0_15, %c0_16] : memref<16x1xf32, #tpu.memory_space<vmem>>, vector<16x1xf32>
    %c6_i32_17 = arith.constant 6 : i32
    %28 = tpu.dynamic_rotate %25 by %c6_i32_17 dim 1 : vector<16x128xf32>, i32 -> vector<16x128xf32>
    %c5_i32_18 = arith.constant 5 : i32
    %29 = tpu.dynamic_rotate %25 by %c5_i32_18 dim 1 : vector<16x128xf32>, i32 -> vector<16x128xf32>
    %c4_i32_19 = arith.constant 4 : i32
    %30 = tpu.dynamic_rotate %25 by %c4_i32_19 dim 1 : vector<16x128xf32>, i32 -> vector<16x128xf32>
    %c1_i32_20 = arith.constant 1 : i32
    %31 = tpu.dynamic_rotate %25 by %c1_i32_20 dim 1 : vector<16x128xf32>, i32 -> vector<16x128xf32>
    %c127_i32_21 = arith.constant 127 : i32
    %32 = tpu.dynamic_rotate %25 by %c127_i32_21 dim 1 : vector<16x128xf32>, i32 -> vector<16x128xf32>
    %c124_i32_22 = arith.constant 124 : i32
    %33 = tpu.dynamic_rotate %25 by %c124_i32_22 dim 1 : vector<16x128xf32>, i32 -> vector<16x128xf32>
    %c123_i32_23 = arith.constant 123 : i32
    %34 = tpu.dynamic_rotate %25 by %c123_i32_23 dim 1 : vector<16x128xf32>, i32 -> vector<16x128xf32>
    %c122_i32_24 = arith.constant 122 : i32
    %35 = tpu.dynamic_rotate %25 by %c122_i32_24 dim 1 : vector<16x128xf32>, i32 -> vector<16x128xf32>
    %36 = tpu.concatenate %28, %29, %30, %31, %25, %32, %33, %34, %35 in 0 : vector<16x128xf32>, vector<16x128xf32>, vector<16x128xf32>, vector<16x128xf32>, vector<16x128xf32>, vector<16x128xf32>, vector<16x128xf32>, vector<16x128xf32>, vector<16x128xf32> -> vector<144x128xf32>
    %cst_25 = arith.constant dense<0.000000e+00> : vector<16x128xf32>
    %37 = tpu.matmul %26, %36, %cst_25 {dimension_numbers = #tpu.dot_dimension_numbers<[1], [0], [0], [1], [0, 0, 1, 1], [], []>} : vector<16x144xf32>, vector<144x128xf32>, vector<16x128xf32> -> vector<16x128xf32>
    %38 = vector.broadcast %27 : vector<16x1xf32> to vector<16x128xf32>
    %39 = arith.addf %37, %38 : vector<16x128xf32>
    %40 = arith.addf %39, %3 : vector<16x128xf32>
    %cst_26 = arith.constant 0.000000e+00 : f32
    %41 = vector.broadcast %cst_26 : f32 to vector<16x128xf32>
    %42 = arith.cmpf oge, %40, %41 : vector<16x128xf32>
    %cst_27 = arith.constant 2.000000e-01 : f32
    %43 = vector.broadcast %cst_27 : f32 to vector<16x128xf32>
    %44 = arith.mulf %43, %40 : vector<16x128xf32>
    %45 = arith.select %42, %40, %44 : vector<16x128xi1>, vector<16x128xf32>
    %c0_28 = arith.constant 0 : index
    %c0_29 = arith.constant 0 : index
    %46 = vector.load %arg8[%c0_28, %c0_29] : memref<128x128xf32, #tpu.memory_space<vmem>>, vector<128x128xf32>
    %cst_30 = arith.constant dense<0.000000e+00> : vector<16x128xf32>
    %47 = tpu.matmul %45, %46, %cst_30 {dimension_numbers = #tpu.dot_dimension_numbers<[1], [0], [0], [1], [0, 0, 1, 1], [], []>} : vector<16x128xf32>, vector<128x128xf32>, vector<16x128xf32> -> vector<16x128xf32>
    %c0_31 = arith.constant 0 : index
    %c0_32 = arith.constant 0 : index
    %48 = vector.load %arg13[%c0_31, %c0_32] : memref<8x16xf32, #tpu.memory_space<vmem>>, vector<8x16xf32>
    %cst_33 = arith.constant dense<0.000000e+00> : vector<8x128xf32>
    %49 = tpu.matmul %48, %47, %cst_33 {dimension_numbers = #tpu.dot_dimension_numbers<[1], [0], [0], [1], [0, 0, 1, 1], [], []>} : vector<8x16xf32>, vector<16x128xf32>, vector<8x128xf32> -> vector<8x128xf32>
    %c0_34 = arith.constant 0 : index
    %c0_35 = arith.constant 0 : index
    %50 = vector.load %arg14[%c0_34, %c0_35] : memref<1x128xf32, #tpu.memory_space<vmem>>, vector<1x128xf32>
    %c0_36 = arith.constant 0 : index
    %c0_37 = arith.constant 0 : index
    %51 = vector.load %arg9[%c0_36, %c0_37] : memref<8x144xf32, #tpu.memory_space<vmem>>, vector<8x144xf32>
    %c0_38 = arith.constant 0 : index
    %c0_39 = arith.constant 0 : index
    %52 = vector.load %arg10[%c0_38, %c0_39] : memref<8x1xf32, #tpu.memory_space<vmem>>, vector<8x1xf32>
    %c10_i32 = arith.constant 10 : i32
    %53 = tpu.dynamic_rotate %47 by %c10_i32 dim 1 : vector<16x128xf32>, i32 -> vector<16x128xf32>
    %c9_i32 = arith.constant 9 : i32
    %54 = tpu.dynamic_rotate %47 by %c9_i32 dim 1 : vector<16x128xf32>, i32 -> vector<16x128xf32>
    %c8_i32 = arith.constant 8 : i32
    %55 = tpu.dynamic_rotate %47 by %c8_i32 dim 1 : vector<16x128xf32>, i32 -> vector<16x128xf32>
    %c1_i32_40 = arith.constant 1 : i32
    %56 = tpu.dynamic_rotate %47 by %c1_i32_40 dim 1 : vector<16x128xf32>, i32 -> vector<16x128xf32>
    %c127_i32_41 = arith.constant 127 : i32
    %57 = tpu.dynamic_rotate %47 by %c127_i32_41 dim 1 : vector<16x128xf32>, i32 -> vector<16x128xf32>
    %c120_i32 = arith.constant 120 : i32
    %58 = tpu.dynamic_rotate %47 by %c120_i32 dim 1 : vector<16x128xf32>, i32 -> vector<16x128xf32>
    %c119_i32 = arith.constant 119 : i32
    %59 = tpu.dynamic_rotate %47 by %c119_i32 dim 1 : vector<16x128xf32>, i32 -> vector<16x128xf32>
    %c118_i32 = arith.constant 118 : i32
    %60 = tpu.dynamic_rotate %47 by %c118_i32 dim 1 : vector<16x128xf32>, i32 -> vector<16x128xf32>
    %61 = tpu.concatenate %53, %54, %55, %56, %47, %57, %58, %59, %60 in 0 : vector<16x128xf32>, vector<16x128xf32>, vector<16x128xf32>, vector<16x128xf32>, vector<16x128xf32>, vector<16x128xf32>, vector<16x128xf32>, vector<16x128xf32>, vector<16x128xf32> -> vector<144x128xf32>
    %cst_42 = arith.constant dense<0.000000e+00> : vector<8x128xf32>
    %62 = tpu.matmul %51, %61, %cst_42 {dimension_numbers = #tpu.dot_dimension_numbers<[1], [0], [0], [1], [0, 0, 1, 1], [], []>} : vector<8x144xf32>, vector<144x128xf32>, vector<8x128xf32> -> vector<8x128xf32>
    %63 = vector.broadcast %52 : vector<8x1xf32> to vector<8x128xf32>
    %64 = arith.addf %62, %63 : vector<8x128xf32>
    %cst_43 = arith.constant 0.000000e+00 : f32
    %65 = vector.broadcast %cst_43 : f32 to vector<8x128xf32>
    %66 = arith.cmpf oge, %64, %65 : vector<8x128xf32>
    %cst_44 = arith.constant 2.000000e-01 : f32
    %67 = vector.broadcast %cst_44 : f32 to vector<8x128xf32>
    %68 = arith.mulf %67, %64 : vector<8x128xf32>
    %69 = arith.select %66, %64, %68 : vector<8x128xi1>, vector<8x128xf32>
    %70 = vector.broadcast %50 : vector<1x128xf32> to vector<8x128xf32>
    %71 = arith.mulf %69, %70 : vector<8x128xf32>
    %c0_45 = arith.constant 0 : index
    %c0_46 = arith.constant 0 : index
    %72 = vector.load %arg11[%c0_45, %c0_46] : memref<8x72xf32, #tpu.memory_space<vmem>>, vector<8x72xf32>
    %c0_47 = arith.constant 0 : index
    %c0_48 = arith.constant 0 : index
    %73 = vector.load %arg12[%c0_47, %c0_48] : memref<8x1xf32, #tpu.memory_space<vmem>>, vector<8x1xf32>
    %c10_i32_49 = arith.constant 10 : i32
    %74 = tpu.dynamic_rotate %71 by %c10_i32_49 dim 1 : vector<8x128xf32>, i32 -> vector<8x128xf32>
    %c9_i32_50 = arith.constant 9 : i32
    %75 = tpu.dynamic_rotate %71 by %c9_i32_50 dim 1 : vector<8x128xf32>, i32 -> vector<8x128xf32>
    %c8_i32_51 = arith.constant 8 : i32
    %76 = tpu.dynamic_rotate %71 by %c8_i32_51 dim 1 : vector<8x128xf32>, i32 -> vector<8x128xf32>
    %c1_i32_52 = arith.constant 1 : i32
    %77 = tpu.dynamic_rotate %71 by %c1_i32_52 dim 1 : vector<8x128xf32>, i32 -> vector<8x128xf32>
    %c127_i32_53 = arith.constant 127 : i32
    %78 = tpu.dynamic_rotate %71 by %c127_i32_53 dim 1 : vector<8x128xf32>, i32 -> vector<8x128xf32>
    %c120_i32_54 = arith.constant 120 : i32
    %79 = tpu.dynamic_rotate %71 by %c120_i32_54 dim 1 : vector<8x128xf32>, i32 -> vector<8x128xf32>
    %c119_i32_55 = arith.constant 119 : i32
    %80 = tpu.dynamic_rotate %71 by %c119_i32_55 dim 1 : vector<8x128xf32>, i32 -> vector<8x128xf32>
    %c118_i32_56 = arith.constant 118 : i32
    %81 = tpu.dynamic_rotate %71 by %c118_i32_56 dim 1 : vector<8x128xf32>, i32 -> vector<8x128xf32>
    %82 = tpu.concatenate %74, %75, %76, %77, %71, %78, %79, %80, %81 in 0 : vector<8x128xf32>, vector<8x128xf32>, vector<8x128xf32>, vector<8x128xf32>, vector<8x128xf32>, vector<8x128xf32>, vector<8x128xf32>, vector<8x128xf32>, vector<8x128xf32> -> vector<72x128xf32>
    %cst_57 = arith.constant dense<0.000000e+00> : vector<8x128xf32>
    %83 = tpu.matmul %72, %82, %cst_57 {dimension_numbers = #tpu.dot_dimension_numbers<[1], [0], [0], [1], [0, 0, 1, 1], [], []>} : vector<8x72xf32>, vector<72x128xf32>, vector<8x128xf32> -> vector<8x128xf32>
    %84 = vector.broadcast %73 : vector<8x1xf32> to vector<8x128xf32>
    %85 = arith.addf %83, %84 : vector<8x128xf32>
    %86 = arith.addf %85, %49 : vector<8x128xf32>
    %cst_58 = arith.constant 0.000000e+00 : f32
    %87 = vector.broadcast %cst_58 : f32 to vector<8x128xf32>
    %88 = arith.cmpf oge, %86, %87 : vector<8x128xf32>
    %cst_59 = arith.constant 2.000000e-01 : f32
    %89 = vector.broadcast %cst_59 : f32 to vector<8x128xf32>
    %90 = arith.mulf %89, %86 : vector<8x128xf32>
    %91 = arith.select %88, %86, %90 : vector<8x128xi1>, vector<8x128xf32>
    %c0_60 = arith.constant 0 : index
    %c0_61 = arith.constant 0 : index
    %92 = vector.load %arg15[%c0_60, %c0_61] : memref<128x384xf32, #tpu.memory_space<vmem>>, vector<128x384xf32>
    %cst_62 = arith.constant dense<0.000000e+00> : vector<8x384xf32>
    %93 = tpu.matmul %91, %92, %cst_62 {dimension_numbers = #tpu.dot_dimension_numbers<[1], [0], [0], [1], [0, 0, 1, 1], [], []>} : vector<8x128xf32>, vector<128x384xf32>, vector<8x384xf32> -> vector<8x384xf32>
    %c0_63 = arith.constant 0 : index
    %c0_64 = arith.constant 0 : index
    %94 = vector.load %arg20[%c0_63, %c0_64] : memref<1x384xf32, #tpu.memory_space<vmem>>, vector<1x384xf32>
    %c0_65 = arith.constant 0 : index
    %c0_66 = arith.constant 0 : index
    %95 = vector.load %arg16[%c0_65, %c0_66] : memref<8x72xf32, #tpu.memory_space<vmem>>, vector<8x72xf32>
    %c0_67 = arith.constant 0 : index
    %c0_68 = arith.constant 0 : index
    %96 = vector.load %arg17[%c0_67, %c0_68] : memref<8x1xf32, #tpu.memory_space<vmem>>, vector<8x1xf32>
    %c19_i32 = arith.constant 19 : i32
    %97 = tpu.dynamic_rotate %93 by %c19_i32 dim 1 : vector<8x384xf32>, i32 -> vector<8x384xf32>
    %c18_i32 = arith.constant 18 : i32
    %98 = tpu.dynamic_rotate %93 by %c18_i32 dim 1 : vector<8x384xf32>, i32 -> vector<8x384xf32>
    %c17_i32 = arith.constant 17 : i32
    %99 = tpu.dynamic_rotate %93 by %c17_i32 dim 1 : vector<8x384xf32>, i32 -> vector<8x384xf32>
    %c1_i32_69 = arith.constant 1 : i32
    %100 = tpu.dynamic_rotate %93 by %c1_i32_69 dim 1 : vector<8x384xf32>, i32 -> vector<8x384xf32>
    %c383_i32 = arith.constant 383 : i32
    %101 = tpu.dynamic_rotate %93 by %c383_i32 dim 1 : vector<8x384xf32>, i32 -> vector<8x384xf32>
    %c367_i32 = arith.constant 367 : i32
    %102 = tpu.dynamic_rotate %93 by %c367_i32 dim 1 : vector<8x384xf32>, i32 -> vector<8x384xf32>
    %c366_i32 = arith.constant 366 : i32
    %103 = tpu.dynamic_rotate %93 by %c366_i32 dim 1 : vector<8x384xf32>, i32 -> vector<8x384xf32>
    %c365_i32 = arith.constant 365 : i32
    %104 = tpu.dynamic_rotate %93 by %c365_i32 dim 1 : vector<8x384xf32>, i32 -> vector<8x384xf32>
    %105 = tpu.concatenate %97, %98, %99, %100, %93, %101, %102, %103, %104 in 0 : vector<8x384xf32>, vector<8x384xf32>, vector<8x384xf32>, vector<8x384xf32>, vector<8x384xf32>, vector<8x384xf32>, vector<8x384xf32>, vector<8x384xf32>, vector<8x384xf32> -> vector<72x384xf32>
    %cst_70 = arith.constant dense<0.000000e+00> : vector<8x384xf32>
    %106 = tpu.matmul %95, %105, %cst_70 {dimension_numbers = #tpu.dot_dimension_numbers<[1], [0], [0], [1], [0, 0, 1, 1], [], []>} : vector<8x72xf32>, vector<72x384xf32>, vector<8x384xf32> -> vector<8x384xf32>
    %107 = vector.broadcast %96 : vector<8x1xf32> to vector<8x384xf32>
    %108 = arith.addf %106, %107 : vector<8x384xf32>
    %cst_71 = arith.constant 0.000000e+00 : f32
    %109 = vector.broadcast %cst_71 : f32 to vector<8x384xf32>
    %110 = arith.cmpf oge, %108, %109 : vector<8x384xf32>
    %cst_72 = arith.constant 2.000000e-01 : f32
    %111 = vector.broadcast %cst_72 : f32 to vector<8x384xf32>
    %112 = arith.mulf %111, %108 : vector<8x384xf32>
    %113 = arith.select %110, %108, %112 : vector<8x384xi1>, vector<8x384xf32>
    %114 = vector.broadcast %94 : vector<1x384xf32> to vector<8x384xf32>
    %115 = arith.mulf %113, %114 : vector<8x384xf32>
    %c0_73 = arith.constant 0 : index
    %c0_74 = arith.constant 0 : index
    %116 = vector.load %arg18[%c0_73, %c0_74] : memref<8x72xf32, #tpu.memory_space<vmem>>, vector<8x72xf32>
    %c0_75 = arith.constant 0 : index
    %c0_76 = arith.constant 0 : index
    %117 = vector.load %arg19[%c0_75, %c0_76] : memref<8x1xf32, #tpu.memory_space<vmem>>, vector<8x1xf32>
    %c19_i32_77 = arith.constant 19 : i32
    %118 = tpu.dynamic_rotate %115 by %c19_i32_77 dim 1 : vector<8x384xf32>, i32 -> vector<8x384xf32>
    %c18_i32_78 = arith.constant 18 : i32
    %119 = tpu.dynamic_rotate %115 by %c18_i32_78 dim 1 : vector<8x384xf32>, i32 -> vector<8x384xf32>
    %c17_i32_79 = arith.constant 17 : i32
    %120 = tpu.dynamic_rotate %115 by %c17_i32_79 dim 1 : vector<8x384xf32>, i32 -> vector<8x384xf32>
    %c1_i32_80 = arith.constant 1 : i32
    %121 = tpu.dynamic_rotate %115 by %c1_i32_80 dim 1 : vector<8x384xf32>, i32 -> vector<8x384xf32>
    %c383_i32_81 = arith.constant 383 : i32
    %122 = tpu.dynamic_rotate %115 by %c383_i32_81 dim 1 : vector<8x384xf32>, i32 -> vector<8x384xf32>
    %c367_i32_82 = arith.constant 367 : i32
    %123 = tpu.dynamic_rotate %115 by %c367_i32_82 dim 1 : vector<8x384xf32>, i32 -> vector<8x384xf32>
    %c366_i32_83 = arith.constant 366 : i32
    %124 = tpu.dynamic_rotate %115 by %c366_i32_83 dim 1 : vector<8x384xf32>, i32 -> vector<8x384xf32>
    %c365_i32_84 = arith.constant 365 : i32
    %125 = tpu.dynamic_rotate %115 by %c365_i32_84 dim 1 : vector<8x384xf32>, i32 -> vector<8x384xf32>
    %126 = tpu.concatenate %118, %119, %120, %121, %115, %122, %123, %124, %125 in 0 : vector<8x384xf32>, vector<8x384xf32>, vector<8x384xf32>, vector<8x384xf32>, vector<8x384xf32>, vector<8x384xf32>, vector<8x384xf32>, vector<8x384xf32>, vector<8x384xf32> -> vector<72x384xf32>
    %cst_85 = arith.constant dense<0.000000e+00> : vector<8x384xf32>
    %127 = tpu.matmul %116, %126, %cst_85 {dimension_numbers = #tpu.dot_dimension_numbers<[1], [0], [0], [1], [0, 0, 1, 1], [], []>} : vector<8x72xf32>, vector<72x384xf32>, vector<8x384xf32> -> vector<8x384xf32>
    %128 = vector.broadcast %117 : vector<8x1xf32> to vector<8x384xf32>
    %129 = arith.addf %127, %128 : vector<8x384xf32>
    %130 = arith.addf %129, %93 : vector<8x384xf32>
    %cst_86 = arith.constant 0.000000e+00 : f32
    %131 = vector.broadcast %cst_86 : f32 to vector<8x384xf32>
    %132 = arith.cmpf oge, %130, %131 : vector<8x384xf32>
    %cst_87 = arith.constant 2.000000e-01 : f32
    %133 = vector.broadcast %cst_87 : f32 to vector<8x384xf32>
    %134 = arith.mulf %133, %130 : vector<8x384xf32>
    %135 = arith.select %132, %130, %134 : vector<8x384xi1>, vector<8x384xf32>
    %136 = vector.broadcast %94 : vector<1x384xf32> to vector<8x384xf32>
    %137 = arith.mulf %135, %136 : vector<8x384xf32>
    %c0_88 = arith.constant 0 : index
    %c0_89 = arith.constant 0 : index
    %138 = vector.load %arg21[%c0_88, %c0_89] : memref<3x200xf32, #tpu.memory_space<vmem>>, vector<3x200xf32>
    %c0_90 = arith.constant 0 : index
    %c0_91 = arith.constant 0 : index
    %139 = vector.load %arg22[%c0_90, %c0_91] : memref<3x1xf32, #tpu.memory_space<vmem>>, vector<3x1xf32>
    %c38_i32 = arith.constant 38 : i32
    %140 = tpu.dynamic_rotate %137 by %c38_i32 dim 1 : vector<8x384xf32>, i32 -> vector<8x384xf32>
    %c37_i32 = arith.constant 37 : i32
    %141 = tpu.dynamic_rotate %137 by %c37_i32 dim 1 : vector<8x384xf32>, i32 -> vector<8x384xf32>
    %c36_i32 = arith.constant 36 : i32
    %142 = tpu.dynamic_rotate %137 by %c36_i32 dim 1 : vector<8x384xf32>, i32 -> vector<8x384xf32>
    %c35_i32 = arith.constant 35 : i32
    %143 = tpu.dynamic_rotate %137 by %c35_i32 dim 1 : vector<8x384xf32>, i32 -> vector<8x384xf32>
    %c34_i32 = arith.constant 34 : i32
    %144 = tpu.dynamic_rotate %137 by %c34_i32 dim 1 : vector<8x384xf32>, i32 -> vector<8x384xf32>
    %c20_i32 = arith.constant 20 : i32
    %145 = tpu.dynamic_rotate %137 by %c20_i32 dim 1 : vector<8x384xf32>, i32 -> vector<8x384xf32>
    %c19_i32_92 = arith.constant 19 : i32
    %146 = tpu.dynamic_rotate %137 by %c19_i32_92 dim 1 : vector<8x384xf32>, i32 -> vector<8x384xf32>
    %c18_i32_93 = arith.constant 18 : i32
    %147 = tpu.dynamic_rotate %137 by %c18_i32_93 dim 1 : vector<8x384xf32>, i32 -> vector<8x384xf32>
    %c17_i32_94 = arith.constant 17 : i32
    %148 = tpu.dynamic_rotate %137 by %c17_i32_94 dim 1 : vector<8x384xf32>, i32 -> vector<8x384xf32>
    %c16_i32 = arith.constant 16 : i32
    %149 = tpu.dynamic_rotate %137 by %c16_i32 dim 1 : vector<8x384xf32>, i32 -> vector<8x384xf32>
    %c2_i32 = arith.constant 2 : i32
    %150 = tpu.dynamic_rotate %137 by %c2_i32 dim 1 : vector<8x384xf32>, i32 -> vector<8x384xf32>
    %c1_i32_95 = arith.constant 1 : i32
    %151 = tpu.dynamic_rotate %137 by %c1_i32_95 dim 1 : vector<8x384xf32>, i32 -> vector<8x384xf32>
    %c383_i32_96 = arith.constant 383 : i32
    %152 = tpu.dynamic_rotate %137 by %c383_i32_96 dim 1 : vector<8x384xf32>, i32 -> vector<8x384xf32>
    %c382_i32 = arith.constant 382 : i32
    %153 = tpu.dynamic_rotate %137 by %c382_i32 dim 1 : vector<8x384xf32>, i32 -> vector<8x384xf32>
    %c368_i32 = arith.constant 368 : i32
    %154 = tpu.dynamic_rotate %137 by %c368_i32 dim 1 : vector<8x384xf32>, i32 -> vector<8x384xf32>
    %c367_i32_97 = arith.constant 367 : i32
    %155 = tpu.dynamic_rotate %137 by %c367_i32_97 dim 1 : vector<8x384xf32>, i32 -> vector<8x384xf32>
    %c366_i32_98 = arith.constant 366 : i32
    %156 = tpu.dynamic_rotate %137 by %c366_i32_98 dim 1 : vector<8x384xf32>, i32 -> vector<8x384xf32>
    %c365_i32_99 = arith.constant 365 : i32
    %157 = tpu.dynamic_rotate %137 by %c365_i32_99 dim 1 : vector<8x384xf32>, i32 -> vector<8x384xf32>
    %c364_i32 = arith.constant 364 : i32
    %158 = tpu.dynamic_rotate %137 by %c364_i32 dim 1 : vector<8x384xf32>, i32 -> vector<8x384xf32>
    %c350_i32 = arith.constant 350 : i32
    %159 = tpu.dynamic_rotate %137 by %c350_i32 dim 1 : vector<8x384xf32>, i32 -> vector<8x384xf32>
    %c349_i32 = arith.constant 349 : i32
    %160 = tpu.dynamic_rotate %137 by %c349_i32 dim 1 : vector<8x384xf32>, i32 -> vector<8x384xf32>
    %c348_i32 = arith.constant 348 : i32
    %161 = tpu.dynamic_rotate %137 by %c348_i32 dim 1 : vector<8x384xf32>, i32 -> vector<8x384xf32>
    %c347_i32 = arith.constant 347 : i32
    %162 = tpu.dynamic_rotate %137 by %c347_i32 dim 1 : vector<8x384xf32>, i32 -> vector<8x384xf32>
    %c346_i32 = arith.constant 346 : i32
    %163 = tpu.dynamic_rotate %137 by %c346_i32 dim 1 : vector<8x384xf32>, i32 -> vector<8x384xf32>
    %164 = tpu.concatenate %140, %141, %142, %143, %144, %145, %146, %147, %148, %149, %150, %151, %137, %152, %153, %154 in 0 : vector<8x384xf32>, vector<8x384xf32>, vector<8x384xf32>, vector<8x384xf32>, vector<8x384xf32>, vector<8x384xf32>, vector<8x384xf32>, vector<8x384xf32>, vector<8x384xf32>, vector<8x384xf32>, vector<8x384xf32>, vector<8x384xf32>, vector<8x384xf32>, vector<8x384xf32>, vector<8x384xf32>, vector<8x384xf32> -> vector<128x384xf32>
    %165 = tpu.concatenate %155, %156, %157, %158, %159, %160, %161, %162, %163 in 0 : vector<8x384xf32>, vector<8x384xf32>, vector<8x384xf32>, vector<8x384xf32>, vector<8x384xf32>, vector<8x384xf32>, vector<8x384xf32>, vector<8x384xf32>, vector<8x384xf32> -> vector<72x384xf32>
    %166 = tpu.concatenate %164, %165 in 0 : vector<128x384xf32>, vector<72x384xf32> -> vector<200x384xf32>
    %cst_100 = arith.constant dense<0.000000e+00> : vector<3x384xf32>
    %167 = tpu.matmul %138, %166, %cst_100 {dimension_numbers = #tpu.dot_dimension_numbers<[1], [0], [0], [1], [0, 0, 1, 1], [], []>} : vector<3x200xf32>, vector<200x384xf32>, vector<3x384xf32> -> vector<3x384xf32>
    %168 = vector.broadcast %139 : vector<3x1xf32> to vector<3x384xf32>
    %169 = arith.addf %167, %168 : vector<3x384xf32>
    %c0_101 = arith.constant 0 : index
    %c0_102 = arith.constant 0 : index
    %c0_103 = arith.constant 0 : index
    %170 = vector.load %arg23[%c0_101, %c0_102, %c0_103] : memref<1x3x384xf32, #tpu.memory_space<vmem>>, vector<1x3x384xf32>
    %171 = vector.shape_cast %170 : vector<1x3x384xf32> to vector<3x384xf32>
    %172 = vector.shape_cast %169 : vector<3x384xf32> to vector<1x3x384xf32>
    tpu.vector_store %arg23[%c0_101, %c0_102, %c0_103], %172 {strides = array<i32>} : memref<1x3x384xf32, #tpu.memory_space<vmem>>, vector<1x3x384xf32>,
    return
  }
  func.func @transform_0(%arg0: i32) -> (i32, i32, i32) {
    %c0_i32 = arith.constant 0 : i32
    %c0_i32_0 = arith.constant 0 : i32
    %c0_i32_1 = arith.constant 0 : i32
    return %arg0, %c0_i32, %c0_i32_0 : i32, i32, i32
  }
  func.func @transform_1(%arg0: i32) -> (i32, i32) {
    %c0_i32 = arith.constant 0 : i32
    %c0_i32_0 = arith.constant 0 : i32
    %c0_i32_1 = arith.constant 0 : i32
    return %c0_i32, %c0_i32_0 : i32, i32
  }
  func.func @transform_2(%arg0: i32) -> (i32, i32) {
    %c0_i32 = arith.constant 0 : i32
    %c0_i32_0 = arith.constant 0 : i32
    %c0_i32_1 = arith.constant 0 : i32
    return %c0_i32, %c0_i32_0 : i32, i32
  }
  func.func @transform_3(%arg0: i32) -> (i32, i32) {
    %c0_i32 = arith.constant 0 : i32
    %c0_i32_0 = arith.constant 0 : i32
    %c0_i32_1 = arith.constant 0 : i32
    return %c0_i32, %c0_i32_0 : i32, i32
  }
  func.func @transform_4(%arg0: i32) -> (i32, i32) {
    %c0_i32 = arith.constant 0 : i32
    %c0_i32_0 = arith.constant 0 : i32
    %c0_i32_1 = arith.constant 0 : i32
    return %c0_i32, %c0_i32_0 : i32, i32
  }
  func.func @transform_5(%arg0: i32) -> (i32, i32) {
    %c0_i32 = arith.constant 0 : i32
    %c0_i32_0 = arith.constant 0 : i32
    %c0_i32_1 = arith.constant 0 : i32
    return %c0_i32, %c0_i32_0 : i32, i32
  }
  func.func @transform_6(%arg0: i32) -> (i32, i32) {
    %c0_i32 = arith.constant 0 : i32
    %c0_i32_0 = arith.constant 0 : i32
    %c0_i32_1 = arith.constant 0 : i32
    return %c0_i32, %c0_i32_0 : i32, i32
  }
  func.func @transform_7(%arg0: i32) -> (i32, i32) {
    %c0_i32 = arith.constant 0 : i32
    %c0_i32_0 = arith.constant 0 : i32
    %c0_i32_1 = arith.constant 0 : i32
    return %c0_i32, %c0_i32_0 : i32, i32
  }
  func.func @transform_8(%arg0: i32) -> (i32, i32) {
    %c0_i32 = arith.constant 0 : i32
    %c0_i32_0 = arith.constant 0 : i32
    %c0_i32_1 = arith.constant 0 : i32
    return %c0_i32, %c0_i32_0 : i32, i32
  }
  func.func @transform_9(%arg0: i32) -> (i32, i32) {
    %c0_i32 = arith.constant 0 : i32
    %c0_i32_0 = arith.constant 0 : i32
    %c0_i32_1 = arith.constant 0 : i32
    return %c0_i32, %c0_i32_0 : i32, i32
  }
  func.func @transform_10(%arg0: i32) -> (i32, i32) {
    %c0_i32 = arith.constant 0 : i32
    %c0_i32_0 = arith.constant 0 : i32
    %c0_i32_1 = arith.constant 0 : i32
    return %c0_i32, %c0_i32_0 : i32, i32
  }
  func.func @transform_11(%arg0: i32) -> (i32, i32) {
    %c0_i32 = arith.constant 0 : i32
    %c0_i32_0 = arith.constant 0 : i32
    %c0_i32_1 = arith.constant 0 : i32
    return %c0_i32, %c0_i32_0 : i32, i32
  }
  func.func @transform_12(%arg0: i32) -> (i32, i32) {
    %c0_i32 = arith.constant 0 : i32
    %c0_i32_0 = arith.constant 0 : i32
    %c0_i32_1 = arith.constant 0 : i32
    return %c0_i32, %c0_i32_0 : i32, i32
  }
  func.func @transform_13(%arg0: i32) -> (i32, i32) {
    %c0_i32 = arith.constant 0 : i32
    %c0_i32_0 = arith.constant 0 : i32
    %c0_i32_1 = arith.constant 0 : i32
    return %c0_i32, %c0_i32_0 : i32, i32
  }
  func.func @transform_14(%arg0: i32) -> (i32, i32) {
    %c0_i32 = arith.constant 0 : i32
    %c0_i32_0 = arith.constant 0 : i32
    %c0_i32_1 = arith.constant 0 : i32
    return %c0_i32, %c0_i32_0 : i32, i32
  }
  func.func @transform_15(%arg0: i32) -> (i32, i32) {
    %c0_i32 = arith.constant 0 : i32
    %c0_i32_0 = arith.constant 0 : i32
    %c0_i32_1 = arith.constant 0 : i32
    return %c0_i32, %c0_i32_0 : i32, i32
  }
  func.func @transform_16(%arg0: i32) -> (i32, i32) {
    %c0_i32 = arith.constant 0 : i32
    %c0_i32_0 = arith.constant 0 : i32
    %c0_i32_1 = arith.constant 0 : i32
    return %c0_i32, %c0_i32_0 : i32, i32
  }
  func.func @transform_17(%arg0: i32) -> (i32, i32) {
    %c0_i32 = arith.constant 0 : i32
    %c0_i32_0 = arith.constant 0 : i32
    %c0_i32_1 = arith.constant 0 : i32
    return %c0_i32, %c0_i32_0 : i32, i32
  }
  func.func @transform_18(%arg0: i32) -> (i32, i32) {
    %c0_i32 = arith.constant 0 : i32
    %c0_i32_0 = arith.constant 0 : i32
    %c0_i32_1 = arith.constant 0 : i32
    return %c0_i32, %c0_i32_0 : i32, i32
  }
  func.func @transform_19(%arg0: i32) -> (i32, i32) {
    %c0_i32 = arith.constant 0 : i32
    %c0_i32_0 = arith.constant 0 : i32
    %c0_i32_1 = arith.constant 0 : i32
    return %c0_i32, %c0_i32_0 : i32, i32
  }
  func.func @transform_20(%arg0: i32) -> (i32, i32) {
    %c0_i32 = arith.constant 0 : i32
    %c0_i32_0 = arith.constant 0 : i32
    %c0_i32_1 = arith.constant 0 : i32
    return %c0_i32, %c0_i32_0 : i32, i32
  }
  func.func @transform_21(%arg0: i32) -> (i32, i32) {
    %c0_i32 = arith.constant 0 : i32
    %c0_i32_0 = arith.constant 0 : i32
    %c0_i32_1 = arith.constant 0 : i32
    return %c0_i32, %c0_i32_0 : i32, i32
  }
  func.func @transform_22(%arg0: i32) -> (i32, i32, i32) {
    %c0_i32 = arith.constant 0 : i32
    %c0_i32_0 = arith.constant 0 : i32
    %c0_i32_1 = arith.constant 0 : i32
    return %arg0, %c0_i32, %c0_i32_0 : i32, i32, i32
  }
}

</mosaic_0001>

<bundles_post_ra>
// kernel: forward.1
= control target key start
LH: loop header
LB: loop body
LE: loop exit
PB: predicated region body
PF: predicated region fallthrough
CT: control target
= control target key end

     0   :  { %s4989_s0 = inlined_call_operand.vmem [shape: f32[2,16,16], index: 0, kind: input, shape index: {}]   ;;  %s4990_s1 = inlined_call_operand.hbm [shape: f32[16,128], index: 1, kind: input, shape index: {}]   ;;  %s4991_s2 = inlined_call_operand.vmem [shape: f32[16,144], index: 2, kind: input, shape index: {}]   ;;  %s4992_s3 = inlined_call_operand.vmem [shape: f32[16,1], index: 3, kind: input, shape index: {}]   ;;  %s4993_s4 = inlined_call_operand.vmem [shape: f32[16,144], index: 4, kind: input, shape index: {}]   ;;  %s4994_s5 = inlined_call_operand.vmem [shape: f32[16,1], index: 5, kind: input, shape index: {}]   ;;  %s4995_s6 = inlined_call_operand.hbm [shape: f32[1,128], index: 6, kind: input, shape index: {}]   ;;  %s4996_s7 = inlined_call_operand.hbm [shape: f32[128,128], index: 7, kind: input, shape index: {}]   ;;  %s4997_s8 = inlined_call_operand.vmem [shape: f32[8,144], index: 8, kind: input, shape index: {}]   ;;  %s4998_s9 = inlined_call_operand.hbm [shape: f32[8,1], index: 9, kind: input, shape index: {}]   ;;  %s4999_s10 = inlined_call_operand.hbm [shape: f32[8,72], index: 10, kind: input, shape index: {}]   ;;  %s5000_s11 = inlined_call_operand.hbm [shape: f32[8,1], index: 11, kind: input, shape index: {}]   ;;  %s5001_s12 = inlined_call_operand.hbm [shape: f32[8,16], index: 12, kind: input, shape index: {}]   ;;  %s5002_s13 = inlined_call_operand.hbm [shape: f32[1,128], index: 13, kind: input, shape index: {}]   ;;  %s5003_s14 = inlined_call_operand.hbm [shape: f32[128,384], index: 14, kind: input, shape index: {}]   ;;  %s5004_s15 = inlined_call_operand.hbm [shape: f32[8,72], index: 15, kind: input, shape index: {}]   ;;  %s5005_s16 = inlined_call_operand.hbm [shape: f32[8,1], index: 16, kind: input, shape index: {}]   ;;  %s5006_s17 = inlined_call_operand.vmem [shape: f32[8,72], index: 17, kind: input, shape index: {}]   ;;  %s5007_s18 = inlined_call_operand.vmem [shape: f32[8,1], index: 18, kind: input, shape index: {}]   ;;  %s5008_s19 = inlined_call_operand.hbm [shape: f32[1,384], index: 19, kind: input, shape index: {}]   ;;  %s5009_s20 = inlined_call_operand.vmem [shape: f32[3,200], index: 20, kind: input, shape index: {}]   ;;  %s5010_s21 = inlined_call_operand.vmem [shape: f32[3,1], index: 21, kind: input, shape index: {}]   ;;  %s5011_s22 = inlined_call_operand.vmem [shape: f32[2,3,384], index: 22, kind: output, shape index: {}]  }
   0x1   :  { %5065 = sst [smem:[#allocation28_spill]] %s4989_s0 }
   0x2   :  { %5066 = sst [smem:[#allocation29_spill]] %s4990_s1 }
   0x3   :  { %5067 = sst [smem:[#allocation30_spill]] %s4991_s2 }
   0x4   :  { %5068 = sst [smem:[#allocation31_spill]] %s4992_s3 }
   0x5   :  { %5069 = sst [smem:[#allocation32_spill]] %s4993_s4 }
   0x6   :  { %5070 = sst [smem:[#allocation33_spill]] %s4994_s5 }
   0x7   :  { %5071 = sst [smem:[#allocation34_spill]] %s4995_s6 }
   0x8   :  { %5072 = sst [smem:[#allocation35_spill]] %s4996_s7 }
   0x9   :  { %5073 = sst [smem:[#allocation36_spill]] %s4997_s8 }
   0xa   :  { %5074 = sst [smem:[#allocation37_spill]] %s4998_s9 }
   0xb   :  { %5075 = sst [smem:[#allocation38_spill]] %s4999_s10 }
   0xc   :  { %5076 = sst [smem:[#allocation39_spill]] %s5000_s11 }
   0xd   :  { %5077 = sst [smem:[#allocation40_spill]] %s5001_s12 }
   0xe   :  { %5078 = sst [smem:[#allocation41_spill]] %s5002_s13 }
   0xf   :  { %5079 = sst [smem:[#allocation42_spill]] %s5003_s14 }
  0x10   :  { %5080 = sst [smem:[#allocation43_spill]] %s5004_s15 }
  0x11   :  { %5081 = sst [smem:[#allocation44_spill]] %s5005_s16 }
  0x12   :  { %5082 = sst [smem:[#allocation45_spill]] %s5006_s17 }
  0x13   :  { %5083 = sst [smem:[#allocation46_spill]] %s5007_s18 }
  0x14   :  { %27 = vsyncpa [#allocation3], 0 }
  0x15   :  { %28 = vsyncpa [#allocation5], 0 }
  0x16   :  { %29 = vsyncpa [#allocation8], 0 }
  0x17   :  { %30 = vsyncpa [#allocation11], 0 }
  0x18   :  { %31 = vsyncpa [#allocation14], 0 }
  0x19   :  { %32 = vsyncpa [#allocation17], 0 }
  0x1a   :  { %33 = vsyncpa [#allocation20], 0  ;;  %s3814_s3 = smov 0  }
  0x1b LB: > { %s3644_s28 = smov [#allocation4]   ;;  %s3820_s30 = sadd.s32 4294967295, %s3642_s3   ;;  %s3642_s3 = sphi %s3814_s3, %s39_s3  }
  0x1c   : > { %s575_s29 = sshll.u32 %s3644_s28, 4  ;;  %p2851_p0 = scmp.ge.s32.totalorder %s3642_s3, 1  ;;  %s576_s29 = int_to_ptr.vmem [resolvable:$true] %s575_s29 }
  0x1d   : > { %p537_p1 = scmp.lt.s32.totalorder %s3642_s3, 3  ;;  %p5016_p2 = scmp.eq.s32.totalorder %s3820_s30, 0 }
  0x1e   : > { %s3645_s0 = smov [#allocation7]   ;;  %s3646_s1 = smov [#allocation10]  }
  0x1f   : > { %p3825_p3 = pnand %p2851_p0, %p537_p1  ;;  %s602_s23 = sshll.u32 %s3645_s0, 4  ;;  %s3831_s23 = int_to_ptr.vmem [resolvable:$true] %s602_s23 }
  0x20   : > { %s624_s5 = sshll.u32 %s3646_s1, 4  ;;  %s3647_s6 = smov [#allocation13]   ;;  %s3839_s5 = int_to_ptr.vmem [resolvable:$true] %s624_s5 }
  0x21   : > { %s5084_s4 = scalar_select %p3825_p3, 1, 0 }
  0x22   : > { %p3169_p4 = pneg %p3825_p3  ;;  %s646_s25 = sshll.u32 %s3647_s6, 4  ;;  %s3841_s25 = int_to_ptr.vmem [resolvable:$true] %s646_s25 }
  0x23   : > { %s3307_s2 = scalar_lea.vmem %s576_s29, 16  ;;  %s3314_s27 = scalar_lea.vmem %s576_s29, 32 }
  0x24   : > { %p3835_p5 = pnand %p5016_p2, %p3169_p4  ;;  %p3308_p7 = scmp.ne.s32.totalorder %s576_s29, %s3307_s2 }
  0x25   : > { %p3315_p10 = scmp.lt.s32.totalorder %s576_s29, %s576_s29  ;;  %p3316_p11 = scmp.lt.s32.totalorder %s3314_s27, %s3307_s2 }
  0x26   : > { %p3845_p6 = pneg %p3835_p5 }
  0x27   : > { %p3317_p12 = por %p3316_p11, %p3315_p10 }
  0x28   : > { %p3310_p8 = pnand %p3308_p7, %p3845_p6 }
  0x2a   : > { %p3311_p9 = pneg %p3310_p8 }
  0x2c   : > { %p3318_p13 = pnand %p3317_p12, %p3311_p9 }
  0x2e   : > { %3321 = shalt.err (!%p3318_p13)
}
  0x2f   : > { %s5087_s1 = sld [smem:[#allocation34_spill]]  ;;  %s3333_s6 = scalar_lea.vmem %s3831_s23, 128 }
  0x30   : > { %p3334_p0 = scmp.ne.s32.totalorder %s3831_s23, %s3333_s6  ;;  %p3341_p7 = scmp.lt.s32.totalorder %s3831_s23, %s3831_s23 }
  0x31   : > { %p3342_p8 = scmp.lt.s32.totalorder %s3333_s6, %s3333_s6 }
  0x32   : > { %p3336_p1 = pnand %p3334_p0, %p3845_p6 }
  0x33   : > { %p3343_p9 = por %p3342_p8, %p3341_p7 }
  0x34   : > { %p3337_p4 = pneg %p3336_p1 }
  0x35   : > { %3175 = dma.hbm_to_vmem [thread:$0]  (!%p3835_p5), %s5087_s1, 16, %s576_s29, [#allocation5]  }
  0x36   : > { %p3344_p10 = pnand %p3343_p9, %p3337_p4 }
  0x38   : > { %3347 = shalt.err (!%p3344_p10)
}
  0x39   : > { %s5088_s9 = sld [smem:[#allocation37_spill]]  ;;  %s3359_s29 = scalar_lea.vmem %s3839_s5, 128 }
  0x3a   : > { %p3360_p11 = scmp.ne.s32.totalorder %s3839_s5, %s3359_s29  ;;  %p3367_p0 = scmp.lt.s32.totalorder %s3839_s5, %s3839_s5 }
  0x3b   : > { %p3368_p1 = scmp.lt.s32.totalorder %s3359_s29, %s3359_s29 }
  0x3c   : > { %p3362_p12 = pnand %p3360_p11, %p3845_p6 }
  0x3d   : > { %p3369_p4 = por %p3368_p1, %p3367_p0 }
  0x3e   : > { %p3363_p13 = pneg %p3362_p12 }
  0x3f   : > { %3181 = dma.hbm_to_vmem [thread:$0]  (!%p3835_p5), %s5088_s9, 128, %s3831_s23, [#allocation8]  }
  0x40   : > { %p3370_p7 = pnand %p3369_p4, %p3363_p13 }
  0x42   : > { %3373 = shalt.err (!%p3370_p7)
}
  0x43   : > { %s5089_s11 = sld [smem:[#allocation39_spill]]  ;;  %s3385_s23 = scalar_lea.vmem %s3841_s25, 16 }
  0x44   : > { %p3386_p8 = scmp.ne.s32.totalorder %s3841_s25, %s3385_s23  ;;  %s3392_s1 = scalar_lea.vmem %s3841_s25, 32 }
  0x45   : > { %p3393_p11 = scmp.lt.s32.totalorder %s3841_s25, %s3841_s25  ;;  %p3394_p12 = scmp.lt.s32.totalorder %s3392_s1, %s3385_s23 }
  0x46   : > { %p3388_p9 = pnand %p3386_p8, %p3845_p6 }
  0x47   : > { %p3395_p13 = por %p3394_p12, %p3393_p11 }
  0x48   : > { %p3389_p10 = pneg %p3388_p9 }
  0x49   : > { %3187 = dma.hbm_to_vmem [thread:$0]  (!%p3835_p5), %s5089_s11, 128, %s3839_s5, [#allocation11]  }
  0x4a   : > { %p3396_p0 = pnand %p3395_p13, %p3389_p10 }
  0x4c   : > { %3399 = shalt.err (!%p3396_p0)
}
  0x4d   : > { %s5090_s13 = sld [smem:[#allocation41_spill]]  ;;  %s3648_s5 = smov [#allocation16]  }
  0x4e   : > { %s670_s27 = sshll.u32 %s3648_s5, 4  ;;  %s3649_s29 = smov [#allocation2]   ;;  %s671_s27 = int_to_ptr.vmem [resolvable:$true] %s670_s27 }
  0x4f   : > { %s549_s28 = sshll.u32 %s3649_s29, 4  ;;  %s3411_s0 = scalar_lea.vmem %s671_s27, 128  ;;  %s550_s28 = int_to_ptr.vmem [resolvable:$true] %s549_s28 }
  0x50   : > { %p3412_p1 = scmp.ne.s32.totalorder %s671_s27, %s3411_s0  ;;  %p3419_p8 = scmp.lt.s32.totalorder %s671_s27, %s671_s27 }
  0x51   : > { %p3420_p9 = scmp.lt.s32.totalorder %s3411_s0, %s3411_s0 }
  0x52   : > { %p3414_p4 = pnand %p3412_p1, %p3845_p6 }
  0x53   : > { %3193 = dma.hbm_to_vmem [thread:$0]  (!%p3835_p5), %s5090_s13, 16, %s3841_s25, [#allocation14]  }
  0x54   : > { %p3415_p7 = pneg %p3414_p4  ;;  %p3421_p10 = por %p3420_p9, %p3419_p8 }
  0x56   : > { %p3422_p11 = pnand %p3421_p10, %p3415_p7 }
  0x58   : > { %3425 = shalt.err (!%p3422_p11)
}
  0x59   : > { %s5091_s15 = sld [smem:[#allocation43_spill]]  ;;  %s3437_s25 = scalar_lea.vmem %s550_s28, 256 }
  0x5a   : > { %p3438_p12 = scmp.ne.s32.totalorder %s550_s28, %s3437_s25  ;;  %p3445_p1 = scmp.lt.s32.totalorder %s550_s28, %s550_s28 }
  0x5b   : > { %p3446_p4 = scmp.lt.s32.totalorder %s3437_s25, %s3437_s25 }
  0x5c   : > { %p3440_p13 = pnand %p3438_p12, %p3845_p6 }
  0x5d   : > { %p3447_p2 = por %p3446_p4, %p3445_p1 }
  0x5e   : > { %p3441_p0 = pneg %p3440_p13 }
  0x5f   : > { %3199 = dma.hbm_to_vmem [thread:$0]  (!%p3835_p5), %s5091_s15, 128, %s671_s27, [#allocation17]  }
  0x60   : > { %p3448_p3 = pnand %p3447_p2, %p3441_p0 }
  0x62   : > { %3451 = shalt.err (!%p3448_p3)
}
  0x63   : > { %s3650_s6 = smov 128   ;;  %s3651_s2 = smov 8  }
  0x64   : > { %s5092_s0 = sld [smem:[#allocation29_spill]]  ;;  %s3652_s27 = smov [#allocation6]  }
  0x65   : > { %s585_s23 = sshll.u32 %s3652_s27, 4  ;;  %s3653_s1 = smov [#allocation9]   ;;  %s586_s23 = int_to_ptr.vmem [resolvable:$true] %s585_s23 }
  0x66   : > { %s613_s9 = sshll.u32 %s3653_s1, 4  ;;  %s3463_s11 = scalar_lea.vmem %s586_s23, 2048  ;;  %s614_s9 = int_to_ptr.vmem [resolvable:$true] %s613_s9 }
  0x67   : > { %p3464_p7 = scmp.ne.s32.totalorder %s586_s23, %s3463_s11  ;;  %p3471_p3 = scmp.lt.s32.totalorder %s586_s23, %s586_s23 }
  0x68   : > { %p3472_p9 = scmp.lt.s32.totalorder %s3463_s11, %s3463_s11 }
  0x69   : > { %p3466_p8 = pnand %p3464_p7, %p3845_p6 }
  0x6a   : > { %3172 = dma.hbm_to_vmem [thread:$0]  (!%p3835_p5), %s5092_s0, 256, %s550_s28, [#allocation3], %s3650_s6, %s3650_s6, %s3651_s2  }
  0x6b   : > { %p3467_p2 = pneg %p3466_p8  ;;  %p3473_p10 = por %p3472_p9, %p3471_p3 }
  0x6d   : > { %p3474_p11 = pnand %p3473_p10, %p3467_p2 }
  0x6f   : > { %3477 = shalt.err (!%p3474_p11)
}
  0x70   : > { %s5093_s7 = sld [smem:[#allocation35_spill]]  ;;  %s3489_s28 = scalar_lea.vmem %s614_s9, 128 }
  0x71   : > { %p3490_p12 = scmp.ne.s32.totalorder %s614_s9, %s3489_s28  ;;  %p3497_p1 = scmp.lt.s32.totalorder %s614_s9, %s614_s9 }
  0x72   : > { %p3498_p4 = scmp.lt.s32.totalorder %s3489_s28, %s3489_s28 }
  0x73   : > { %p3492_p13 = pnand %p3490_p12, %p3845_p6 }
  0x74   : > { %p3499_p7 = por %p3498_p4, %p3497_p1 }
  0x75   : > { %p3493_p0 = pneg %p3492_p13 }
  0x76   : > { %3178 = dma.hbm_to_vmem [thread:$0]  (!%p3835_p5), %s5093_s7, 2048, %s586_s23, [#allocation5], %s3650_s6, %s3650_s6, %s3651_s2  }
  0x77   : > { %p3500_p8 = pnand %p3499_p7, %p3493_p0 }
  0x79   : > { %3503 = shalt.err (!%p3500_p8)
}
  0x7a   : > { %s5094_s10 = sld [smem:[#allocation38_spill]]  ;;  %s3654_s0 = smov [#allocation12]  }
  0x7b   : > { %s635_s6 = sshll.u32 %s3654_s0, 4  ;;  %s3655_s2 = smov [#allocation15]   ;;  %s636_s6 = int_to_ptr.vmem [resolvable:$true] %s635_s6 }
  0x7c   : > { %s656_s27 = sshll.u32 %s3655_s2, 4  ;;  %s3515_s23 = scalar_lea.vmem %s636_s6, 128  ;;  %s657_s27 = int_to_ptr.vmem [resolvable:$true] %s656_s27 }
  0x7d   : > { %p3516_p2 = scmp.ne.s32.totalorder %s636_s6, %s3515_s23  ;;  %p3523_p10 = scmp.lt.s32.totalorder %s636_s6, %s636_s6 }
  0x7e   : > { %p3524_p11 = scmp.lt.s32.totalorder %s3515_s23, %s3515_s23 }
  0x7f   : > { %p3518_p3 = pnand %p3516_p2, %p3845_p6 }
  0x80   : > { %3184 = dma.hbm_to_vmem [thread:$0]  (!%p3835_p5), %s5094_s10, 128, %s614_s9, [#allocation8]  }
  0x81   : > { %p3519_p9 = pneg %p3518_p3  ;;  %p3525_p12 = por %p3524_p11, %p3523_p10 }
  0x83   : > { %p3526_p13 = pnand %p3525_p12, %p3519_p9 }
  0x85   : > { %3529 = shalt.err (!%p3526_p13)
}
  0x86   : > { %s5095_s12 = sld [smem:[#allocation40_spill]]  ;;  %s3541_s9 = scalar_lea.vmem %s657_s27, 6144 }
  0x87   : > { %p3542_p0 = scmp.ne.s32.totalorder %s657_s27, %s3541_s9  ;;  %p3549_p7 = scmp.lt.s32.totalorder %s657_s27, %s657_s27 }
  0x88   : > { %p3550_p8 = scmp.lt.s32.totalorder %s3541_s9, %s3541_s9 }
  0x89   : > { %p3544_p1 = pnand %p3542_p0, %p3845_p6 }
  0x8a   : > { %p3551_p2 = por %p3550_p8, %p3549_p7 }
  0x8b   : > { %p3545_p4 = pneg %p3544_p1 }
  0x8c   : > { %3190 = dma.hbm_to_vmem [thread:$0]  (!%p3835_p5), %s5095_s12, 128, %s636_s6, [#allocation11]  }
  0x8d   : > { %p3552_p3 = pnand %p3551_p2, %p3545_p4 }
  0x8f   : > { %3555 = shalt.err (!%p3552_p3)
}
  0x90   : > { %s3656_s5 = smov 384   ;;  %s3657_s28 = smov 24  }
  0x91   : > { %s5096_s14 = sld [smem:[#allocation42_spill]]  ;;  %s3658_s0 = smov [#allocation18]  }
  0x92   : > { %s681_s6 = sshll.u32 %s3658_s0, 4  ;;  %s3659_s2 = smov [#allocation19]   ;;  %s682_s6 = int_to_ptr.vmem [resolvable:$true] %s681_s6 }
  0x93   : > { %s698_s23 = sshll.u32 %s3659_s2, 4  ;;  %s3567_s1 = scalar_lea.vmem %s682_s6, 128  ;;  %s699_s23 = int_to_ptr.vmem [resolvable:$true] %s698_s23 }
  0x94   : > { %p3568_p9 = scmp.ne.s32.totalorder %s682_s6, %s3567_s1  ;;  %p3575_p12 = scmp.lt.s32.totalorder %s682_s6, %s682_s6 }
  0x95   : > { %p3576_p13 = scmp.lt.s32.totalorder %s3567_s1, %s3567_s1 }
  0x96   : > { %p3570_p10 = pnand %p3568_p9, %p3845_p6 }
  0x97   : > { %3196 = dma.hbm_to_vmem [thread:$0]  (!%p3835_p5), %s5096_s14, 6144, %s657_s27, [#allocation14], %s3656_s5, %s3656_s5, %s3657_s28  }
  0x98   : > { %p3571_p11 = pneg %p3570_p10  ;;  %p3577_p0 = por %p3576_p13, %p3575_p12 }
  0x9a   : > { %p3578_p1 = pnand %p3577_p0, %p3571_p11 }
  0x9c   : > { %3581 = shalt.err (!%p3578_p1)
}
  0x9d   : > { %s5097_s16 = sld [smem:[#allocation44_spill]]  ;;  %s3593_s27 = scalar_lea.vmem %s699_s23, 48 }
  0x9e   : > { %p3594_p4 = scmp.ne.s32.totalorder %s699_s23, %s3593_s27  ;;  %s3600_s5 = scalar_lea.vmem %s699_s23, 64 }
  0x9f   : > { %p3601_p2 = scmp.lt.s32.totalorder %s699_s23, %s699_s23  ;;  %p3602_p3 = scmp.lt.s32.totalorder %s3600_s5, %s3593_s27 }
  0xa0   : > { %p3596_p7 = pnand %p3594_p4, %p3845_p6 }
  0xa1   : > { %p3603_p9 = por %p3602_p3, %p3601_p2 }
  0xa2   : > { %p3597_p8 = pneg %p3596_p7 }
  0xa3   : > { %3202 = dma.hbm_to_vmem [thread:$0]  (!%p3835_p5), %s5097_s16, 128, %s682_s6, [#allocation17]  }
  0xa4   : > { %p3604_p10 = pnand %p3603_p9, %p3597_p8 }
  0xa6   : > { %3607 = shalt.err (!%p3604_p10)
}
  0xa7   : > { %3205 = dma.hbm_to_vmem [thread:$0]  (!%p3835_p5), %s5008_s19, 48, %s699_s23, [#allocation20]  }
  0xa8   : > { %p5098_p11 = scmp.ne.s32.totalorder %s5084_s4, 0 }
  0xa9   : > { %p5099_p12 = scmp.eq.s32.totalorder (!%p5098_p11), %s3820_s30, 0 }
  0xaa   : > { %725 = sbr.rel (%p5098_p11) target bundleno = 3357 (0xd1d), region = 108 }
  0xaf   : > { %3613 = dma.done.wait (%p5099_p12), [#allocation3], 256   ;;  %p5100_p6 = pmov %p5099_p12 }
  0xb1   : > { %3615 = vsyncadd (%p5100_p6), [#allocation3], 4294967040  ;;  %p5101_p13 = pmov %p5100_p6 }
  0xb2   : > { %p5102_p0 = pmov %p5100_p6 }
  0xb3   : > { %3617 = dma.done.wait (%p5101_p13), [#allocation5], 2064  }
  0xb4   : > { %3619 = vsyncadd (%p5102_p0), [#allocation5], 4294965232  ;;  %p5103_p1 = pmov %p5102_p0 }
  0xb5   : > { %p5104_p5 = pmov %p5102_p0 }
  0xb6   : > { %3621 = dma.done.wait (%p5103_p1), [#allocation8], 256  }
  0xb7   : > { %3623 = vsyncadd (%p5104_p5), [#allocation8], 4294967040  ;;  %p5105_p4 = pmov %p5102_p0 }
  0xb8   : > { %p5106_p7 = pmov %p5102_p0 }
  0xb9   : > { %3625 = dma.done.wait (%p5105_p4), [#allocation11], 256  }
  0xba   : > { %3627 = vsyncadd (%p5106_p7), [#allocation11], 4294967040  ;;  %p5107_p8 = pmov %p5102_p0 }
  0xbb   : > { %p5108_p2 = pmov %p5102_p0 }
  0xbc   : > { %3629 = dma.done.wait (%p5107_p8), [#allocation14], 6160  }
  0xbd   : > { %3631 = vsyncadd (%p5108_p2), [#allocation14], 4294961136  ;;  %p5109_p3 = pmov %p5102_p0 }
  0xbe   : > { %p5110_p9 = pmov %p5102_p0 }
  0xbf   : > { %3633 = dma.done.wait (%p5109_p3), [#allocation17], 256  }
  0xc0   : > { %3635 = vsyncadd (%p5110_p9), [#allocation17], 4294967040  ;;  %p5111_p10 = pmov %p5102_p0 }
  0xc1   : > { %p5112_p11 = pmov %p5102_p0 }
  0xc2   : > { %3637 = dma.done.wait (%p5111_p10), [#allocation20], 48  }
  0xc3   : > { %3639 = vsyncadd (%p5112_p11), [#allocation20], 4294967248  ;;  %p831_p12 = scmp.lt.s32.totalorder %s3820_s30, 1  ;;  %s5113_s29 = sld [smem:[#allocation28_spill]]  ;;  %vm845_vm0 = vcmask 130048   ;;  %v844_v0 = vld [vmem:[#allocation2 + $0x8] sm:$0xff] }
  0xc4   : > { %v843_v1 = vld [vmem:[#allocation2] sm:$0xff]  ;;  %2973 = vmatprep.subr.mxu0 %v844_v0  ;;  %v3660_v4 = vmov 0.0   ;;  %s3661_s6 = smov 124   ;;  %s3662_s2 = smov 123   ;;  %v3669_v8 = vmov 0   ;;  %v1223_v47 = vld [vmem:[#allocation6 + $0x78] sm:$0xff] }
  0xc5   : > { %s5147_s30 = smov (!%p831_p12, %s3820_s30), 1  ;;  %2974 = vmatpush3.msra.mxu0 %v844_v0  ;;  %982 = vmatprep.subr.mxu1 %v3660_v4  ;;  %s5057_s23 = smov 127   ;;  %v2885_v35 = vld [vmem:[#allocation4] ss:$0 sm:$0xff]  ;;  %v1222_v48 = vld [vmem:[#allocation6 + $0x70] sm:$0xff]  ;;  %v1221_v50 = vld [vmem:[#allocation6 + $0x68] sm:$0xff] }
  0xc6   : > { %s2900_s4 = sshll.u32 %s5147_s30, 4  ;;  %2975 = vmatprep.subr.mxu0 %v843_v1  ;;  %s5058_s1 = smov 1   ;;  %3294 = vset.pattern.permute.xlu1 %v3669_v8  ;;  %v1220_v51 = vld [vmem:[#allocation6 + $0x60] sm:$0xff]  ;;  %v1219_v52 = vld [vmem:[#allocation6 + $0x58] sm:$0xff]  ;;  %v1218_v53 = vld [vmem:[#allocation6 + $0x50] sm:$0xff]  ;;  %vm3670_vm5 = vmmov 0  }
  0xc7   : > { %2976 = vmatpush3.msra.mxu0 %v843_v1  ;;  %s3665_s25 = smov 4   ;;  %s3666_s9 = smov 5   ;;  %3293 = vset.pattern.permute.xlu0 %v3669_v8  ;;  %v1217_v54 = vld [vmem:[#allocation6 + $0x48] sm:$0xff]  ;;  %v1216_v55 = vld [vmem:[#allocation6 + $0x40] sm:$0xff]  ;;  %v1215_v56 = vld [vmem:[#allocation6 + $0x38] sm:$0xff]  ;;  %vm1520_vm7 = vcmask 588800  }
  0xc8   : > { %1125 = vmatprep.subr.mxu0 %v3660_v4  ;;  %s5114_s28 = sld [smem:[#allocation30_spill]]  ;;  %s3667_s11 = smov 6   ;;  %v1214_v57 = vld [vmem:[#allocation6 + $0x30] sm:$0xff] }
  0xc9   : > { %s835_s0 = scalar_lea.vmem %s5113_s29, %s2900_s4  ;;  %s5018_s4 = smov 122  }
  0xca   : > { %v841_v2 = vld [vmem:[%s835_s0] sm:$0xff]  ;;  %v842_v3 = vld [vmem:[%s835_s0 + $0x8] sm:$0xff]  ;;  %s5115_s29 = sld [smem:[#allocation31_spill]]  ;;  %s5117_s5 = smov 122  }
  0xcb   : > { %2977 = vmatprep.mubr.msk.f32.mxu0 %vm845_vm0, %v841_v2  ;;  %s5118_s26 = sld [smem:[#allocation33_spill]]  ;;  %s3673_s0 = smov 8  }
  0xcc   : > { %2978 = vmatmul.mubr.msk.f32.vlgmr.msra.gmra.mxu0 %vm845_vm0, %v842_v3  ;;  %s5119_s8 = sld [smem:[#allocation36_spill]]  ;;  %s5022_s24 = smov 126  }
  0xcd   : > { %s5120_s18 = sld [smem:[#allocation46_spill]]  ;;  %s5054_s27 = smov 112  }
  0xce   : > { %v929_v7 = vld [vmem:[%s5114_s28 + $0x8] sm:$0xff]  ;;  %v928_v26 = vld [vmem:[%s5114_s28] sm:$0xff]  ;;  %v931_v28 = vld [vmem:[%s5114_s28 + $0x18] sm:$0xff]  ;;  %s5121_s17 = sld [smem:[#allocation45_spill]]  ;;  %s5134_s7 = smov 91  }
  0xcf   : > { %2883 = vmatprep.mubr.msk.f32.mxu1 %vm845_vm0, %v929_v7  ;;  %v930_v29 = vld [vmem:[%s5114_s28 + $0x10] sm:$0xff]  ;;  %s5136_s10 = smov 93   ;;  %s5137_s12 = smov 94  }
  0xd0   : > { %v932_v9 = vld [vmem:[%s5115_s29] sm:$0xff]  ;;  %v933_v10 = vld [vmem:[%s5115_s29 + $0x8] sm:$0xff]  ;;  %s5138_s13 = smov 108   ;;  %s5139_s14 = smov 109  }
  0xd1   : > { %v1076_v46 = vld [vmem:[%s5118_s26 + $0x8] sm:$0xff]  ;;  %v1075_v49 = vld [vmem:[%s5118_s26] sm:$0xff]  ;;  %s5140_s15 = smov 110   ;;  %s5141_s16 = smov 112  }
 0x18c   : > { %v3991_v5 = vpop.f32.mrf.mxu0 }
 0x18d   : > { %956 = vrot.lane.b32.xlu1 %v3991_v5, %s3661_s6  ;;  %960 = vrot.lane.b32.xlu0 %v3991_v5, %s3662_s2 }
 0x18e   : > { %v3997_v6 = vpop.f32.mrf.mxu0 }
 0x191   : > { %954 = vrot.lane.b32.xlu1 %v3997_v6, %s3661_s6  ;;  %958 = vrot.lane.b32.xlu0 %v3997_v6, %s3662_s2 }
 0x195   : > { %950 = vrot.lane.b32.xlu1 %v3997_v6, %s5057_s23  ;;  %952 = vrot.lane.b32.xlu0 %v3991_v5, %s5057_s23 }
 0x199   : > { %946 = vrot.lane.b32.xlu1 %v3997_v6, %s5058_s1  ;;  %948 = vrot.lane.b32.xlu0 %v3991_v5, %s5058_s1 }
 0x19d   : > { %942 = vrot.lane.b32.xlu1 %v3997_v6, %s3665_s25  ;;  %944 = vrot.lane.b32.xlu0 %v3991_v5, %s3665_s25 }
 0x1a1   : > { %938 = vrot.lane.b32.xlu1 %v3997_v6, %s3666_s9  ;;  %940 = vrot.lane.b32.xlu0 %v3991_v5, %s3666_s9 }
 0x1a5   : > { %934 = vrot.lane.b32.xlu1 %v3997_v6, %s3667_s11  ;;  %936 = vrot.lane.b32.xlu0 %v3991_v5, %s3667_s11 }
 0x1a9   : > { %962 = vrot.lane.b32.xlu1 %v3997_v6, %s5018_s4  ;;  %964 = vrot.lane.b32.xlu0 %v3991_v5, %s5018_s4  ;;  %s5116_s4 = sld [smem:[#allocation32_spill]] }
 0x1ad   : > { %968 = vperm.xlu1 %3294, %v932_v9   ;;  %973 = vperm.xlu0 %3293, %v933_v10  }
 0x1af   : > { %v1072_v45 = vld [vmem:[%s5116_s4 + $0x8] sm:$0xff] }
 0x1b0   : > { %2886 = vmatprep.mubr.msk.f32.mxu0 %vm845_vm0, %v1072_v45 }
 0x1ff   : > { %v957_v11 = vpop.permute.xlu1 %956  ;;  %v961_v12 = vpop.permute.xlu0 %960 }
 0x200   : > { %983 = vmatpush1.msra.mxu1 %v961_v12  ;;  %v1071_v12 = vld [vmem:[%s5116_s4] sm:$0xff] }
 0x201   : > { %984 = vmatprep.subr.mxu1 %v3660_v4 }
 0x203   : > { %v955_v13 = vpop.permute.xlu1 %954  ;;  %v959_v14 = vpop.permute.xlu0 %958 }
 0x204   : > { %985 = vmatpush1.msra.mxu1 %v959_v14  ;;  %v1074_v14 = vld [vmem:[%s5116_s4 + $0x18] sm:$0xff] }
 0x205   : > { %986 = vmatprep.subr.mxu1 %v3660_v4 }
 0x206   : > { %987 = vmatpush1.msra.mxu1 %v957_v11 }
 0x207   : > { %v951_v15 = vpop.permute.xlu1 %950  ;;  %988 = vmatprep.subr.mxu1 %v3660_v4  ;;  %v953_v16 = vpop.permute.xlu0 %952 }
 0x208   : > { %989 = vmatpush1.msra.mxu1 %v955_v13 }
 0x209   : > { %990 = vmatprep.subr.mxu1 %v3660_v4 }
 0x20a   : > { %991 = vmatpush1.msra.mxu1 %v953_v16  ;;  %v1213_v16 = vld [vmem:[#allocation6 + $0x28] sm:$0xff] }
 0x20b   : > { %v947_v17 = vpop.permute.xlu1 %946  ;;  %992 = vmatprep.subr.mxu1 %v3660_v4  ;;  %v949_v18 = vpop.permute.xlu0 %948 }
 0x20c   : > { %993 = vmatpush1.msra.mxu1 %v951_v15  ;;  %v1073_v15 = vld [vmem:[%s5116_s4 + $0x10] sm:$0xff]  ;;  %s5133_s4 = smov 90  }
 0x20d   : > { %994 = vmatprep.subr.mxu1 %v3660_v4 }
 0x20e   : > { %995 = vmatpush1.msra.mxu1 %v3991_v5 }
 0x20f   : > { %996 = vmatprep.subr.mxu1 %v3660_v4  ;;  %v945_v19 = vpop.permute.xlu0 %944  ;;  %v943_v20 = vpop.permute.xlu1 %942 }
 0x210   : > { %997 = vmatpush1.msra.mxu1 %v3997_v6 }
 0x211   : > { %998 = vmatprep.subr.mxu1 %v3660_v4 }
 0x212   : > { %999 = vmatpush1.msra.mxu1 %v949_v18  ;;  %v1211_v18 = vld [vmem:[#allocation6 + $0x18] sm:$0xff] }
 0x213   : > { %1000 = vmatprep.subr.mxu1 %v3660_v4  ;;  %v941_v21 = vpop.permute.xlu0 %940  ;;  %v939_v22 = vpop.permute.xlu1 %938 }
 0x214   : > { %1001 = vmatpush1.msra.mxu1 %v947_v17  ;;  %v1212_v17 = vld [vmem:[#allocation6 + $0x20] sm:$0xff] }
 0x215   : > { %1002 = vmatprep.subr.mxu1 %v3660_v4 }
 0x216   : > { %1003 = vmatpush1.msra.mxu1 %v945_v19  ;;  %v1210_v19 = vld [vmem:[#allocation6 + $0x10] sm:$0xff] }
 0x217   : > { %1004 = vmatprep.subr.mxu1 %v3660_v4  ;;  %v937_v23 = vpop.permute.xlu0 %936  ;;  %v935_v24 = vpop.permute.xlu1 %934 }
 0x218   : > { %1005 = vmatpush1.msra.mxu1 %v943_v20  ;;  %v1209_v20 = vld [vmem:[#allocation6 + $0x8] sm:$0xff] }
 0x219   : > { %1006 = vmatprep.subr.mxu1 %v3660_v4 }
 0x21a   : > { %1007 = vmatpush1.msra.mxu1 %v941_v21  ;;  %v1208_v21 = vld [vmem:[#allocation6] sm:$0xff] }
 0x21b   : > { %1008 = vmatprep.subr.mxu1 %v3660_v4  ;;  %v965_v25 = vpop.permute.xlu0 %964  ;;  %v963_v27 = vpop.permute.xlu1 %962 }
 0x21c   : > { %1009 = vmatpush1.msra.mxu1 %v939_v22 }
 0x21d   : > { %1010 = vmatprep.subr.mxu1 %v3660_v4 }
 0x21e   : > { %1011 = vmatpush1.msra.mxu1 %v937_v23 }
 0x21f   : > { %1012 = vmatprep.subr.mxu1 %v3660_v4 }
 0x220   : > { %1013 = vmatpush1.msra.mxu1 %v935_v24 }
 0x221   : > { %1042 = vmatprep.subr.mxu1 %v3660_v4 }
 0x222   : > { %1043 = vmatpush2.msra.mxu1 %v965_v25 }
 0x223   : > { %1044 = vmatprep.subr.mxu1 %v3660_v4 }
 0x224   : > { %1045 = vmatpush2.msra.mxu1 %v963_v27 }
 0x225   : > { %1047 = vmatmul.mubr.f32.vlgmr.msra.gmra.mxu1 %v928_v26  ;;  %2980 = vmatprep.subr.mxu1 %v1223_v47 }
 0x226   : > { %2884 = vmatprep.mubr.msk.f32.mxu1 %vm845_vm0, %v931_v28  ;;  %2981 = vmatpush3.msra.mxu1 %v1223_v47 }
 0x227   : > { %2982 = vmatprep.subr.mxu1 %v1222_v48 }
 0x228   : > { %v969_v30 = vpop.permute.xlu1 %968  ;;  %v974_v34 = vpop.permute.xlu0 %973  ;;  %2983 = vmatpush3.msra.mxu1 %v1222_v48 }
 0x229   : > { %1052 = vmatmul.mubr.f32.gmra.mxu1 %v930_v29  ;;  %2984 = vmatprep.subr.mxu1 %v1221_v50 }
 0x22a   : > { %2985 = vmatpush3.msra.mxu1 %v1221_v50 }
 0x22b   : > { %2986 = vmatprep.subr.mxu1 %v1220_v51 }
 0x22c   : > { %2987 = vmatpush3.msra.mxu1 %v1220_v51 }
 0x22d   : > { %2988 = vmatprep.subr.mxu1 %v1219_v52 }
 0x22e   : > { %2989 = vmatpush3.msra.mxu1 %v1219_v52 }
 0x22f   : > { %2990 = vmatprep.subr.mxu1 %v1218_v53 }
 0x230   : > { %2991 = vmatpush3.msra.mxu1 %v1218_v53 }
 0x231   : > { %2992 = vmatprep.subr.mxu1 %v1217_v54 }
 0x232   : > { %2993 = vmatpush3.msra.mxu1 %v1217_v54  ;;  %v1374_v54 = vld [vmem:[%s5119_s8] sm:$0xff] }
 0x233   : > { %2994 = vmatprep.subr.mxu1 %v1216_v55 }
 0x234   : > { %2995 = vmatpush3.msra.mxu1 %v1216_v55 }
 0x235   : > { %2996 = vmatprep.subr.mxu1 %v1215_v56 }
 0x236   : > { %2997 = vmatpush3.msra.mxu1 %v1215_v56 }
 0x237   : > { %2998 = vmatprep.subr.mxu1 %v1214_v57 }
 0x238   : > { %2999 = vmatpush3.msra.mxu1 %v1214_v57 }
 0x239   : > { %3000 = vmatprep.subr.mxu1 %v1213_v16 }
 0x23a   : > { %3001 = vmatpush3.msra.mxu1 %v1213_v16  ;;  %v1629_v16 = vld [vmem:[#allocation15 + $0xf8] sm:$0xff] }
 0x23b   : > { %3002 = vmatprep.subr.mxu1 %v1212_v17 }
 0x23c   : > { %3003 = vmatpush3.msra.mxu1 %v1212_v17  ;;  %v1628_v17 = vld [vmem:[#allocation15 + $0xf0] sm:$0xff] }
 0x23d   : > { %3004 = vmatprep.subr.mxu1 %v1211_v18 }
 0x23e   : > { %3005 = vmatpush3.msra.mxu1 %v1211_v18  ;;  %v1626_v18 = vld [vmem:[#allocation15 + $0xe0] sm:$0xff] }
 0x23f   : > { %3006 = vmatprep.subr.mxu1 %v1210_v19 }
 0x240   : > { %3007 = vmatpush3.msra.mxu1 %v1210_v19  ;;  %v1625_v19 = vld [vmem:[#allocation15 + $0xd8] sm:$0xff] }
 0x241   : > { %3008 = vmatprep.subr.mxu1 %v1209_v20 }
 0x242   : > { %3009 = vmatpush3.msra.mxu1 %v1209_v20  ;;  %v1623_v20 = vld [vmem:[#allocation15 + $0xc8] sm:$0xff] }
 0x243   : > { %3010 = vmatprep.subr.mxu1 %v1208_v21 }
 0x244   : > { %3011 = vmatpush3.msra.mxu1 %v1208_v21  ;;  %v1622_v21 = vld [vmem:[#allocation15 + $0xc0] sm:$0xff] }
 0x245   : > { %3022 = vmatprep.subr.mxu1 %v3660_v4 }
 0x2e5   : > { %v1048_v31 = vpop.f32.mrf.mxu1 }
 0x2e6   : > { %v1049_v32 = vadd.f32 %v1048_v31, %v969_v30 }
 0x2e7   : > { %v1050_v33 = vpop.f32.mrf.mxu1 }
 0x2e8   : > { %vm1057_vm1 = vcmp.ge.f32.partialorder %v1049_v32, 0.0  ;;  %v1059_v36 = vmul.f32 0.2, %v1049_v32 }
 0x2e9   : > { %v1053_v37 = vpop.f32.mrf.mxu1 }
 0x2ea   : > { %v1061_v38 = vsel %vm1057_vm1, %v1049_v32, %v1059_v36  ;;  %v1054_v39 = vadd.f32 %v1053_v37, %v974_v34  ;;  %v1299_v36 = vld [vmem:[#allocation12] sm:$0xff] }
 0x2eb   : > { %v4066_v40 = vmul.f32 %v2885_v35, %v1061_v38  ;;  %v1055_v41 = vpop.f32.mrf.mxu1  ;;  %v1375_v37 = vld [vmem:[%s5119_s8 + $0x8] sm:$0xff]  ;;  %v1376_v38 = vld [vmem:[#allocation7] sm:$0xff]  ;;  %s5135_s8 = smov 92  }
 0x2ec   : > { %vm1058_vm2 = vcmp.ge.f32.partialorder %v1054_v39, 0.0  ;;  %v1060_v42 = vmul.f32 0.2, %v1054_v39 }
 0x2ed   : > { %1101 = vrot.lane.b32.xlu0 %v4066_v40, %s3662_s2 }
 0x2ee   : > { %v1062_v43 = vsel %vm1058_vm2, %v1054_v39, %v1060_v42 }
 0x2ef   : > { %v4070_v44 = vmul.f32 %v2885_v35, %v1062_v43 }
 0x2f1   : > { %1097 = vrot.lane.b32.xlu0 %v4066_v40, %s3661_s6  ;;  %1103 = vrot.lane.b32.xlu1 %v4070_v44, %s3662_s2  ;;  %s3675_s2 = smov 10  }
 0x2f5   : > { %1093 = vrot.lane.b32.xlu0 %v4066_v40, %s5057_s23  ;;  %1099 = vrot.lane.b32.xlu1 %v4070_v44, %s3661_s6  ;;  %s5063_s6 = smov 18  }
 0x2f9   : > { %1089 = vrot.lane.b32.xlu0 %v4066_v40, %s5058_s1  ;;  %1095 = vrot.lane.b32.xlu1 %v4070_v44, %s5057_s23 }
 0x2fd   : > { %1085 = vrot.lane.b32.xlu0 %v4066_v40, %s3665_s25  ;;  %1091 = vrot.lane.b32.xlu1 %v4070_v44, %s5058_s1 }
 0x301   : > { %1081 = vrot.lane.b32.xlu0 %v4066_v40, %s3666_s9  ;;  %1087 = vrot.lane.b32.xlu1 %v4070_v44, %s3665_s25  ;;  %s3671_s25 = smov 119  }
 0x305   : > { %1077 = vrot.lane.b32.xlu0 %v4066_v40, %s3667_s11  ;;  %1083 = vrot.lane.b32.xlu1 %v4070_v44, %s3666_s9  ;;  %s3672_s9 = smov 120  }
 0x309   : > { %1105 = vrot.lane.b32.xlu0 %v4066_v40, %s5117_s5  ;;  %1079 = vrot.lane.b32.xlu1 %v4070_v44, %s3667_s11  ;;  %s3674_s11 = smov 9  }
 0x30d   : > { %1116 = vperm.xlu0 %3293, %v1076_v46   ;;  %1107 = vrot.lane.b32.xlu1 %v4070_v44, %s5117_s5  ;;  %s3676_s5 = smov 118  }
 0x311   : > { %1111 = vperm.xlu1 %3294, %v1075_v49  }
 0x35f   : > { %v1102_v58 = vpop.permute.xlu0 %1101 }
 0x363   : > { %v1104_v59 = vpop.permute.xlu1 %1103  ;;  %v1098_v60 = vpop.permute.xlu0 %1097 }
 0x364   : > { %1126 = vmatpush1.msra.mxu0 %v1104_v59 }
 0x365   : > { %1127 = vmatprep.subr.mxu0 %v3660_v4 }
 0x366   : > { %1128 = vmatpush1.msra.mxu0 %v1102_v58 }
 0x367   : > { %v1100_v61 = vpop.permute.xlu1 %1099  ;;  %1129 = vmatprep.subr.mxu0 %v3660_v4  ;;  %v1094_v62 = vpop.permute.xlu0 %1093 }
 0x368   : > { %1130 = vmatpush1.msra.mxu0 %v1100_v61 }
 0x369   : > { %1131 = vmatprep.subr.mxu0 %v3660_v4 }
 0x36a   : > { %1132 = vmatpush1.msra.mxu0 %v1098_v60 }
 0x36b   : > { %v1096_v63 = vpop.permute.xlu1 %1095  ;;  %1133 = vmatprep.subr.mxu0 %v3660_v4  ;;  %v1090_v0 = vpop.permute.xlu0 %1089 }
 0x36c   : > { %1134 = vmatpush1.msra.mxu0 %v1096_v63 }
 0x36d   : > { %1135 = vmatprep.subr.mxu0 %v3660_v4 }
 0x36e   : > { %1136 = vmatpush1.msra.mxu0 %v1094_v62  ;;  %v2890_v62 = vld [vmem:[#allocation13] ss:$0 sm:$0xff] }
 0x36f   : > { %v1092_v1 = vpop.permute.xlu1 %1091  ;;  %1137 = vmatprep.subr.mxu0 %v3660_v4  ;;  %v1086_v2 = vpop.permute.xlu0 %1085 }
 0x370   : > { %1138 = vmatpush1.msra.mxu0 %v4070_v44 }
 0x371   : > { %1139 = vmatprep.subr.mxu0 %v3660_v4 }
 0x372   : > { %1140 = vmatpush1.msra.mxu0 %v4066_v40 }
 0x373   : > { %v1088_v3 = vpop.permute.xlu1 %1087  ;;  %1141 = vmatprep.subr.mxu0 %v3660_v4  ;;  %v1082_v8 = vpop.permute.xlu0 %1081 }
 0x374   : > { %1142 = vmatpush1.msra.mxu0 %v1092_v1 }
 0x375   : > { %1143 = vmatprep.subr.mxu0 %v3660_v4 }
 0x376   : > { %1144 = vmatpush1.msra.mxu0 %v1090_v0 }
 0x377   : > { %v1084_v7 = vpop.permute.xlu1 %1083  ;;  %1145 = vmatprep.subr.mxu0 %v3660_v4  ;;  %v1078_v10 = vpop.permute.xlu0 %1077 }
 0x378   : > { %1146 = vmatpush1.msra.mxu0 %v1088_v3  ;;  %v1643_v3 = vld [vmem:[#allocation15 + $0x168] sm:$0xff] }
 0x379   : > { %1147 = vmatprep.subr.mxu0 %v3660_v4 }
 0x37a   : > { %1148 = vmatpush1.msra.mxu0 %v1086_v2  ;;  %v1644_v2 = vld [vmem:[#allocation15 + $0x170] sm:$0xff] }
 0x37b   : > { %1149 = vmatprep.subr.mxu0 %v3660_v4  ;;  %v1080_v9 = vpop.permute.xlu1 %1079  ;;  %v1106_v13 = vpop.permute.xlu0 %1105 }
 0x37c   : > { %1150 = vmatpush1.msra.mxu0 %v1084_v7  ;;  %v1641_v7 = vld [vmem:[#allocation15 + $0x158] sm:$0xff] }
 0x37d   : > { %1151 = vmatprep.subr.mxu0 %v3660_v4 }
 0x37e   : > { %1152 = vmatpush1.msra.mxu0 %v1082_v8  ;;  %v1498_v8 = vld [vmem:[#allocation10] sm:$0xff] }
 0x37f   : > { %1153 = vmatprep.subr.mxu0 %v3660_v4  ;;  %v1108_v11 = vpop.permute.xlu1 %1107 }
 0x380   : > { %1154 = vmatpush1.msra.mxu0 %v1080_v9  ;;  %v1640_v9 = vld [vmem:[#allocation15 + $0x150] sm:$0xff] }
 0x381   : > { %1155 = vmatprep.subr.mxu0 %v3660_v4 }
 0x382   : > { %1156 = vmatpush1.msra.mxu0 %v1078_v10  ;;  %v1638_v10 = vld [vmem:[#allocation15 + $0x140] sm:$0xff] }
 0x383   : > { %1185 = vmatprep.subr.mxu0 %v3660_v4 }
 0x384   : > { %1186 = vmatpush2.msra.mxu0 %v1108_v11  ;;  %v1637_v11 = vld [vmem:[#allocation15 + $0x138] sm:$0xff] }
 0x385   : > { %1187 = vmatprep.subr.mxu0 %v3660_v4 }
 0x386   : > { %1188 = vmatpush2.msra.mxu0 %v1106_v13  ;;  %v1634_v13 = vld [vmem:[#allocation15 + $0x120] sm:$0xff] }
 0x387   : > { %1190 = vmatmul.mubr.f32.vlgmr.msra.gmra.mxu0 %v1071_v12  ;;  %3015 = vmatprep.subr.mxu0 %v3660_v4  ;;  %v1635_v12 = vld [vmem:[#allocation15 + $0x128] sm:$0xff] }
 0x388   : > { %2887 = vmatprep.mubr.msk.f32.mxu0 %vm845_vm0, %v1074_v14  ;;  %v1117_v27 = vpop.permute.xlu0 %1116  ;;  %v1632_v14 = vld [vmem:[#allocation15 + $0x110] sm:$0xff] }
 0x38b   : > { %1195 = vmatmul.mubr.f32.gmra.mxu0 %v1073_v15  ;;  %v1631_v15 = vld [vmem:[#allocation15 + $0x108] sm:$0xff] }
 0x38c   : > { %v1112_v22 = vpop.permute.xlu1 %1111  ;;  %3019 = vmatprep.mubr.msk.f32.mxu0 %vm3670_vm5, %v3660_v4 }
 0x447   : > { %v1191_v23 = vpop.f32.mrf.mxu0 }
 0x448   : > { %v1192_v24 = vadd.f32 %v1191_v23, %v1112_v22  ;;  %v1620_v22 = vld [vmem:[#allocation15 + $0xb0] sm:$0xff]  ;;  %v1619_v23 = vld [vmem:[#allocation15 + $0xa8] sm:$0xff] }
 0x449   : > { %v1193_v25 = vpop.f32.mrf.mxu0 }
 0x44a   : > { %v1200_v26 = vadd.f32 %v1192_v24, %v3997_v6  ;;  %v1617_v24 = vld [vmem:[#allocation15 + $0x98] sm:$0xff]  ;;  %v1616_v25 = vld [vmem:[#allocation15 + $0x90] sm:$0xff] }
 0x44b   : > { %v1196_v28 = vpop.f32.mrf.mxu0 }
 0x44c   : > { %v1197_v29 = vadd.f32 %v1196_v28, %v1117_v27  ;;  %vm1202_vm3 = vcmp.ge.f32.partialorder %v1200_v26, 0.0  ;;  %v1204_v30 = vmul.f32 0.2, %v1200_v26  ;;  %v1613_v27 = vld [vmem:[#allocation15 + $0x78] sm:$0xff]  ;;  %v1611_v28 = vld [vmem:[#allocation15 + $0x68] sm:$0xff] }
 0x44d   : > { %v1198_v31 = vpop.f32.mrf.mxu0 }
 0x44e   : > { %v1201_v32 = vadd.f32 %v3991_v5, %v1197_v29  ;;  %v1206_v33 = vsel %vm1202_vm3, %v1200_v26, %v1204_v30  ;;  %v1614_v26 = vld [vmem:[#allocation15 + $0x80] sm:$0xff] }
 0x44f   : > { %3012 = vmatprep.mubr.f32.mxu1 %v1206_v33  ;;  %v1610_v29 = vld [vmem:[#allocation15 + $0x60] sm:$0xff] }
 0x450   : > { %vm1203_vm4 = vcmp.ge.f32.partialorder %v1201_v32, 0.0  ;;  %v1205_v34 = vmul.f32 0.2, %v1201_v32 }
 0x452   : > { %v1207_v35 = vsel %vm1203_vm4, %v1201_v32, %v1205_v34 }
 0x453   : > { %3013 = vmatmul.mubr.f32.vlgmr.msra.gmra.mxu1 %v1207_v35 }
 0x454   : > { %3040 = vmatprep.mubr.msk.f32.mxu1 %vm3670_vm5, %v3660_v4 }
 0x513   : > { %v3014_v6 = vpop.f32.mrf.mxu1 }
 0x514   : > { %1403 = vrot.lane.b32.xlu1 %v3014_v6, %s3671_s25  ;;  %3016 = vmatpush3.msra.mxu0 %v3014_v6 }
 0x515   : > { %v1290_v5 = vpop.f32.mrf.mxu1  ;;  %3017 = vmatprep.subr.mxu0 %v3660_v4 }
 0x516   : > { %1401 = vrot.lane.b32.xlu0 %v1290_v5, %s3671_s25  ;;  %3018 = vmatpush3.msra.mxu0 %v1290_v5 }
 0x517   : > { %3020 = vmatmul.mubr.msk.f32.vlgmr.msra.gmra.mxu0 %vm845_vm0, %v1299_v36  ;;  %1417 = vmatprep.subr.mxu0 %v3660_v4  ;;  %v1497_v36 = vld [vmem:[#allocation9] sm:$0xff] }
 0x518   : > { %1399 = vrot.lane.b32.xlu1 %v3014_v6, %s3672_s9  ;;  %2889 = vmatprep.mubr.msk.f32.mxu0 %vm845_vm0, %v1375_v37  ;;  %v1645_v37 = vld [vmem:[#allocation15 + $0x178] sm:$0xff] }
 0x51a   : > { %1397 = vrot.lane.b32.xlu0 %v1290_v5, %s3672_s9 }
 0x51c   : > { %1395 = vrot.lane.b32.xlu1 %v3014_v6, %s5057_s23 }
 0x51e   : > { %1393 = vrot.lane.b32.xlu0 %v1290_v5, %s5057_s23 }
 0x520   : > { %1391 = vrot.lane.b32.xlu1 %v3014_v6, %s5058_s1 }
 0x522   : > { %1389 = vrot.lane.b32.xlu0 %v1290_v5, %s5058_s1 }
 0x524   : > { %1387 = vrot.lane.b32.xlu1 %v3014_v6, %s3673_s0 }
 0x526   : > { %1385 = vrot.lane.b32.xlu0 %v1290_v5, %s3673_s0 }
 0x528   : > { %1383 = vrot.lane.b32.xlu1 %v3014_v6, %s3674_s11 }
 0x52a   : > { %1381 = vrot.lane.b32.xlu0 %v1290_v5, %s3674_s11 }
 0x52c   : > { %1379 = vrot.lane.b32.xlu1 %v3014_v6, %s3675_s2 }
 0x52e   : > { %1377 = vrot.lane.b32.xlu0 %v1290_v5, %s3675_s2 }
 0x530   : > { %1407 = vrot.lane.b32.xlu1 %v3014_v6, %s3676_s5 }
 0x532   : > { %1405 = vrot.lane.b32.xlu0 %v1290_v5, %s3676_s5 }
 0x534   : > { %1411 = vperm.xlu1 %3294, %v1376_v38   ;;  %v1642_v38 = vld [vmem:[#allocation15 + $0x160] sm:$0xff] }
 0x586   : > { %v1404_v39 = vpop.permute.xlu1 %1403 }
 0x587   : > { %1418 = vmatpush1.msra.mxu0 %v1404_v39  ;;  %v1639_v39 = vld [vmem:[#allocation15 + $0x148] sm:$0xff] }
 0x588   : > { %v1402_v40 = vpop.permute.xlu0 %1401  ;;  %1419 = vmatprep.subr.mxu0 %v3660_v4 }
 0x589   : > { %1420 = vmatpush1.msra.mxu0 %v1402_v40  ;;  %v1636_v40 = vld [vmem:[#allocation15 + $0x130] sm:$0xff] }
 0x58a   : > { %v1400_v41 = vpop.permute.xlu1 %1399  ;;  %1421 = vmatprep.subr.mxu0 %v3660_v4 }
 0x58b   : > { %1422 = vmatpush1.msra.mxu0 %v1400_v41  ;;  %v1633_v41 = vld [vmem:[#allocation15 + $0x118] sm:$0xff] }
 0x58c   : > { %v1398_v42 = vpop.permute.xlu0 %1397  ;;  %1423 = vmatprep.subr.mxu0 %v3660_v4 }
 0x58d   : > { %1424 = vmatpush1.msra.mxu0 %v1398_v42  ;;  %v1630_v42 = vld [vmem:[#allocation15 + $0x100] sm:$0xff] }
 0x58e   : > { %v1396_v43 = vpop.permute.xlu1 %1395  ;;  %1425 = vmatprep.subr.mxu0 %v3660_v4 }
 0x58f   : > { %1426 = vmatpush1.msra.mxu0 %v1396_v43  ;;  %v1627_v43 = vld [vmem:[#allocation15 + $0xe8] sm:$0xff] }
 0x590   : > { %v1394_v44 = vpop.permute.xlu0 %1393  ;;  %1427 = vmatprep.subr.mxu0 %v3660_v4 }
 0x591   : > { %1428 = vmatpush1.msra.mxu0 %v1394_v44  ;;  %v1624_v44 = vld [vmem:[#allocation15 + $0xd0] sm:$0xff] }
 0x592   : > { %v1392_v45 = vpop.permute.xlu1 %1391  ;;  %1429 = vmatprep.subr.mxu0 %v3660_v4 }
 0x593   : > { %1430 = vmatpush1.msra.mxu0 %v3014_v6 }
 0x594   : > { %v1390_v46 = vpop.permute.xlu0 %1389  ;;  %1431 = vmatprep.subr.mxu0 %v3660_v4 }
 0x595   : > { %1432 = vmatpush1.msra.mxu0 %v1290_v5 }
 0x596   : > { %v1388_v47 = vpop.permute.xlu1 %1387  ;;  %1433 = vmatprep.subr.mxu0 %v3660_v4 }
 0x597   : > { %1434 = vmatpush1.msra.mxu0 %v1392_v45  ;;  %v1621_v45 = vld [vmem:[#allocation15 + $0xb8] sm:$0xff] }
 0x598   : > { %v1386_v48 = vpop.permute.xlu0 %1385  ;;  %1435 = vmatprep.subr.mxu0 %v3660_v4 }
 0x599   : > { %1436 = vmatpush1.msra.mxu0 %v1390_v46  ;;  %v1618_v46 = vld [vmem:[#allocation15 + $0xa0] sm:$0xff] }
 0x59a   : > { %v1384_v49 = vpop.permute.xlu1 %1383  ;;  %1437 = vmatprep.subr.mxu0 %v3660_v4 }
 0x59b   : > { %1438 = vmatpush1.msra.mxu0 %v1388_v47  ;;  %v1615_v47 = vld [vmem:[#allocation15 + $0x88] sm:$0xff] }
 0x59c   : > { %v1382_v50 = vpop.permute.xlu0 %1381  ;;  %1439 = vmatprep.subr.mxu0 %v3660_v4 }
 0x59d   : > { %1440 = vmatpush1.msra.mxu0 %v1386_v48  ;;  %v1612_v48 = vld [vmem:[#allocation15 + $0x70] sm:$0xff] }
 0x59e   : > { %1441 = vmatprep.subr.mxu0 %v3660_v4  ;;  %v1380_v51 = vpop.permute.xlu1 %1379 }
 0x59f   : > { %1442 = vmatpush1.msra.mxu0 %v1384_v49  ;;  %v1608_v49 = vld [vmem:[#allocation15 + $0x50] sm:$0xff] }
 0x5a0   : > { %1443 = vmatprep.subr.mxu0 %v3660_v4  ;;  %v1378_v52 = vpop.permute.xlu0 %1377 }
 0x5a1   : > { %1444 = vmatpush1.msra.mxu0 %v1382_v50  ;;  %v1607_v50 = vld [vmem:[#allocation15 + $0x48] sm:$0xff] }
 0x5a2   : > { %1445 = vmatprep.subr.mxu0 %v3660_v4  ;;  %v1408_v53 = vpop.permute.xlu1 %1407 }
 0x5a3   : > { %1446 = vmatpush1.msra.mxu0 %v1380_v51  ;;  %v1609_v51 = vld [vmem:[#allocation15 + $0x58] sm:$0xff] }
 0x5a4   : > { %1447 = vmatprep.subr.mxu0 %v3660_v4  ;;  %v1406_v55 = vpop.permute.xlu0 %1405 }
 0x5a5   : > { %1448 = vmatpush1.msra.mxu0 %v1378_v52  ;;  %v1605_v52 = vld [vmem:[#allocation15 + $0x38] sm:$0xff] }
 0x5a6   : > { %1477 = vmatprep.subr.mxu0 %v3660_v4 }
 0x5a7   : > { %1478 = vmatpush2.msra.mxu0 %v1408_v53  ;;  %v1604_v53 = vld [vmem:[#allocation15 + $0x30] sm:$0xff] }
 0x5a8   : > { %1479 = vmatprep.subr.mxu0 %v3660_v4 }
 0x5a9   : > { %1480 = vmatpush2.msra.mxu0 %v1406_v55  ;;  %v1602_v55 = vld [vmem:[#allocation15 + $0x20] sm:$0xff] }
 0x5aa   : > { %1482 = vmatmul.mubr.f32.vlgmr.msra.gmra.mxu0 %v1374_v54  ;;  %1646 = vmatprep.subr.mxu0 %v1644_v2  ;;  %v1606_v54 = vld [vmem:[#allocation15 + $0x40] sm:$0xff] }
 0x5ab   : > { %1710 = vmatprep.mubr.f32.mxu0 %v3660_v4  ;;  %1647 = vmatpush1.msra.mxu0 %v1643_v3 }
 0x5ac   : > { %1648 = vmatprep.subr.mxu0 %v1641_v7 }
 0x5ad   : > { %1649 = vmatpush1.msra.mxu0 %v1640_v9 }
 0x5ae   : > { %1650 = vmatprep.subr.mxu0 %v1638_v10 }
 0x5af   : > { %v1412_v58 = vpop.permute.xlu1 %1411  ;;  %1651 = vmatpush1.msra.mxu0 %v1637_v11  ;;  %v1789_v11 = vld [vmem:[#allocation18] sm:$0xff] }
 0x5b0   : > { %1652 = vmatprep.subr.mxu0 %v1635_v12  ;;  %v1796_v12 = vlaneseq }
 0x5b1   : > { %1653 = vmatpush1.msra.mxu0 %v1634_v13 }
 0x5b2   : > { %1654 = vmatprep.subr.mxu0 %v1632_v14  ;;  %v4301_v13 = vand.u32 127, %v1796_v12 }
 0x5b3   : > { %1655 = vmatpush1.msra.mxu0 %v1631_v15 }
 0x5b4   : > { %1656 = vmatprep.subr.mxu0 %v1629_v16  ;;  %vm1868_vm9 = vcmp.lt.s32.totalorder %v4301_v13, 109  ;;  %vm1858_vm10 = vcmp.lt.s32.totalorder %v4301_v13, 110  ;;  %vm1848_vm11 = vcmp.lt.s32.totalorder %v4301_v13, 111  ;;  %vm1838_vm12 = vcmp.lt.s32.totalorder %v4301_v13, 127 }
 0x5b5   : > { %1657 = vmatpush1.msra.mxu0 %v1628_v17  ;;  %vm1828_vm13 = vcmp.lt.s32.totalorder %v4301_v13, 1  ;;  %vm1818_vm14 = vcmp.lt.s32.totalorder %v4301_v13, 17  ;;  %vm1808_vm15 = vcmp.lt.s32.totalorder %v4301_v13, 18  ;;  %vm1798_vm0 = vcmp.lt.s32.totalorder %v4301_v13, 19 }
 0x5b6   : > { %1658 = vmatprep.subr.mxu0 %v1626_v18 }
 0x5b7   : > { %1659 = vmatpush1.msra.mxu0 %v1625_v19 }
 0x5b8   : > { %1660 = vmatprep.subr.mxu0 %v1623_v20 }
 0x5b9   : > { %1661 = vmatpush1.msra.mxu0 %v1622_v21 }
 0x5ba   : > { %1662 = vmatprep.subr.mxu0 %v1620_v22 }
 0x5bb   : > { %1663 = vmatpush1.msra.mxu0 %v1619_v23 }
 0x5bc   : > { %1664 = vmatprep.subr.mxu0 %v1617_v24 }
 0x5bd   : > { %1665 = vmatpush1.msra.mxu0 %v1616_v25 }
 0x5be   : > { %1666 = vmatprep.subr.mxu0 %v1614_v26 }
 0x5bf   : > { %1667 = vmatpush1.msra.mxu0 %v1613_v27 }
 0x5c0   : > { %1668 = vmatprep.subr.mxu0 %v1611_v28 }
 0x5c1   : > { %1669 = vmatpush1.msra.mxu0 %v1610_v29 }
 0x5c2   : > { %1670 = vmatprep.subr.mxu0 %v1608_v49 }
 0x5c3   : > { %1671 = vmatpush1.msra.mxu0 %v1607_v50 }
 0x5c4   : > { %1672 = vmatprep.subr.mxu0 %v1605_v52 }
 0x5c5   : > { %1673 = vmatpush1.msra.mxu0 %v1604_v53 }
 0x5c6   : > { %1674 = vmatprep.subr.mxu0 %v1602_v55 }
 0x5d7   : > { %v4193_v56 = vpop.f32.mrf.mxu0 }
 0x5d9   : > { %v3021_v57 = vpop.f32.mrf.mxu0 }
 0x5da   : > { %v1601_v57 = vld [vmem:[#allocation15 + $0x18] sm:$0xff] }
 0x5db   : > { %1675 = vmatpush1.msra.mxu0 %v1601_v57 }
 0x66a   : > { %v1483_v59 = vpop.f32.mrf.mxu0 }
 0x66b   : > { %v1484_v60 = vadd.f32 %v1483_v59, %v1412_v58  ;;  %v1603_v58 = vld [vmem:[#allocation15 + $0x28] sm:$0xff] }
 0x66c   : > { %v1485_v61 = vpop.f32.mrf.mxu0  ;;  %v1599_v59 = vld [vmem:[#allocation15 + $0x8] sm:$0xff] }
 0x66d   : > { %vm1487_vm6 = vcmp.ge.f32.partialorder %v1484_v60, 0.0  ;;  %v1488_v63 = vmul.f32 0.2, %v1484_v60  ;;  %v1600_v61 = vld [vmem:[#allocation15 + $0x10] sm:$0xff]  ;;  %1676 = vmatprep.subr.mxu0 %v1599_v59 }
 0x66f   : > { %v1489_v0 = vsel %vm1487_vm6, %v1484_v60, %v1488_v63  ;;  %v1598_v60 = vld [vmem:[#allocation15] sm:$0xff] }
 0x670   : > { %v4195_v1 = vmul.f32 %v2890_v62, %v1489_v0  ;;  %1677 = vmatpush1.msra.mxu0 %v1598_v60 }
 0x672   : > { %1511 = vrot.lane.b32.xlu1 %v4195_v1, %s3671_s25  ;;  %1513 = vrot.lane.b32.xlu0 %v4195_v1, %s3676_s5  ;;  %s5048_s25 = smov 109   ;;  %s5024_s5 = smov 2  }
 0x676   : > { %1507 = vrot.lane.b32.xlu1 %v4195_v1, %s5057_s23  ;;  %1509 = vrot.lane.b32.xlu0 %v4195_v1, %s3672_s9  ;;  %s5055_s9 = smov 110  }
 0x67a   : > { %1503 = vrot.lane.b32.xlu1 %v4195_v1, %s3673_s0  ;;  %1505 = vrot.lane.b32.xlu0 %v4195_v1, %s5058_s1  ;;  %s5020_s0 = smov 111  }
 0x67e   : > { %1499 = vrot.lane.b32.xlu1 %v4195_v1, %s3675_s2  ;;  %1501 = vrot.lane.b32.xlu0 %v4195_v1, %s3674_s11  ;;  %s5026_s11 = smov 17   ;;  %s5028_s2 = smov 19  }
 0x682   : > { %1517 = vperm.xlu0 %3293, %v1498_v8  }
 0x6e4   : > { %v1512_v30 = vpop.permute.xlu1 %1511  ;;  %v1514_v31 = vpop.permute.xlu0 %1513 }
 0x6e5   : > { %3023 = vmatpush3.msra.mxu1 %v1514_v31 }
 0x6e6   : > { %3024 = vmatprep.subr.mxu1 %v3660_v4 }
 0x6e7   : > { %3025 = vmatpush3.msra.mxu1 %v1512_v30 }
 0x6e8   : > { %v1508_v32 = vpop.permute.xlu1 %1507  ;;  %3026 = vmatprep.subr.mxu1 %v3660_v4  ;;  %v1510_v33 = vpop.permute.xlu0 %1509 }
 0x6e9   : > { %3027 = vmatpush3.msra.mxu1 %v1510_v33 }
 0x6ea   : > { %3028 = vmatprep.subr.mxu1 %v3660_v4 }
 0x6eb   : > { %3029 = vmatpush3.msra.mxu1 %v1508_v32 }
 0x6ec   : > { %3030 = vmatprep.subr.mxu1 %v3660_v4  ;;  %v1506_v34 = vpop.permute.xlu0 %1505  ;;  %v1504_v35 = vpop.permute.xlu1 %1503 }
 0x6ed   : > { %3031 = vmatpush3.msra.mxu1 %v4195_v1 }
 0x6ee   : > { %3032 = vmatprep.subr.mxu1 %v3660_v4 }
 0x6ef   : > { %3033 = vmatpush3.msra.mxu1 %v1506_v34 }
 0x6f0   : > { %3034 = vmatprep.subr.mxu1 %v3660_v4  ;;  %v1502_v6 = vpop.permute.xlu0 %1501  ;;  %v1500_v5 = vpop.permute.xlu1 %1499 }
 0x6f1   : > { %3035 = vmatpush3.msra.mxu1 %v1504_v35 }
 0x6f2   : > { %3036 = vmatprep.subr.mxu1 %v3660_v4 }
 0x6f3   : > { %3037 = vmatpush3.msra.mxu1 %v1502_v6 }
 0x6f4   : > { %3038 = vmatprep.subr.mxu1 %v3660_v4 }
 0x6f5   : > { %3039 = vmatpush3.msra.mxu1 %v1500_v5 }
 0x6f6   : > { %3041 = vmatmul.mubr.msk.f32.vlgmr.msra.gmra.mxu1 %vm1520_vm7, %v1497_v36  ;;  %3043 = vmatprep.subr.mxu1 %v3660_v4 }
 0x6f7   : > { %3044 = vmatpush3.msra.mxu1 %v1645_v37  ;;  %3075 = vmatprep.mubr.msk.f32.mxu1 %vm3670_vm5, %v3660_v4 }
 0x6f8   : > { %3045 = vmatprep.subr.mxu1 %v3660_v4 }
 0x6f9   : > { %3046 = vmatpush3.msra.mxu1 %v1642_v38 }
 0x6fa   : > { %3047 = vmatprep.subr.mxu1 %v3660_v4 }
 0x6fb   : > { %3048 = vmatpush3.msra.mxu1 %v1639_v39 }
 0x6fc   : > { %3049 = vmatprep.subr.mxu1 %v3660_v4 }
 0x6fd   : > { %3050 = vmatpush3.msra.mxu1 %v1636_v40  ;;  %v1518_v62 = vpop.permute.xlu0 %1517 }
 0x6fe   : > { %3051 = vmatprep.subr.mxu1 %v3660_v4 }
 0x6ff   : > { %3052 = vmatpush3.msra.mxu1 %v1633_v41 }
 0x700   : > { %3053 = vmatprep.subr.mxu1 %v3660_v4 }
 0x701   : > { %3054 = vmatpush3.msra.mxu1 %v1630_v42 }
 0x702   : > { %3055 = vmatprep.subr.mxu1 %v3660_v4 }
 0x703   : > { %3056 = vmatpush3.msra.mxu1 %v1627_v43 }
 0x704   : > { %3057 = vmatprep.subr.mxu1 %v3660_v4 }
 0x705   : > { %3058 = vmatpush3.msra.mxu1 %v1624_v44 }
 0x706   : > { %3059 = vmatprep.subr.mxu1 %v3660_v4 }
 0x707   : > { %3060 = vmatpush3.msra.mxu1 %v1621_v45 }
 0x708   : > { %3061 = vmatprep.subr.mxu1 %v3660_v4 }
 0x709   : > { %3062 = vmatpush3.msra.mxu1 %v1618_v46 }
 0x70a   : > { %3063 = vmatprep.subr.mxu1 %v3660_v4 }
 0x70b   : > { %3064 = vmatpush3.msra.mxu1 %v1615_v47 }
 0x70c   : > { %3065 = vmatprep.subr.mxu1 %v3660_v4 }
 0x70d   : > { %3066 = vmatpush3.msra.mxu1 %v1612_v48 }
 0x70e   : > { %3067 = vmatprep.subr.mxu1 %v3660_v4 }
 0x70f   : > { %3068 = vmatpush3.msra.mxu1 %v1609_v51 }
 0x710   : > { %3069 = vmatprep.subr.mxu1 %v3660_v4 }
 0x711   : > { %3070 = vmatpush3.msra.mxu1 %v1606_v54 }
 0x712   : > { %3071 = vmatprep.subr.mxu1 %v3660_v4 }
 0x713   : > { %3072 = vmatpush3.msra.mxu1 %v1603_v58  ;;  %v1788_v58 = vld [vmem:[#allocation16] sm:$0xff] }
 0x714   : > { %3073 = vmatprep.subr.mxu1 %v3660_v4 }
 0x715   : > { %3074 = vmatpush3.msra.mxu1 %v1600_v61 }
 0x716   : > { %3078 = vmatprep.subr.mxu1 %v3660_v4 }
 0x7b6   : > { %v1590_v63 = vpop.f32.mrf.mxu1 }
 0x7b7   : > { %v1591_v0 = vadd.f32 %v1590_v63, %v1518_v62  ;;  %v2032_v62 = vshrl.u32 %v1796_v12, 7 }
 0x7b8   : > { %v3042_v1 = vpop.f32.mrf.mxu1 }
 0x7b9   : > { %v1594_v2 = vadd.f32 %v1591_v0, %v4193_v56  ;;  %v2041_v63 = vsub.s32 2, %v2032_v62  ;;  %v1787_v0 = vld [vmem:[#allocation19] sm:$0x7]  ;;  %v2033_v12 = vsub.s32 0, %v2032_v62 }
 0x7bb   : > { %v1596_v3 = vmul.f32 0.2, %v1594_v2  ;;  %vm1595_vm8 = vcmp.ge.f32.partialorder %v1594_v2, 0.0 }
 0x7bd   : > { %v1597_v7 = vsel %vm1595_vm8, %v1594_v2, %v1596_v3  ;;  %vm2420_vm8 = vcmp.lt.s32.totalorder %v4301_v13, 126 }
 0x7be   : > { %1711 = vmatmul.mubr.f32.vlgmr.msra.gmra.mxu0 %v1597_v7  ;;  %3076 = vmatmul.mubr.f32.vlgmr.msra.gmra.mxu1 %v1597_v7  ;;  %v4377_v7 = vrot.slane %v1787_v0, %v2041_v63 }
 0x7bf   : > { %3096 = vmatprep.mubr.msk.f32.mxu1 %vm3670_vm5, %v3660_v4  ;;  %1944 = vmatprep.mubr.f32.mxu0 %v3660_v4 }
 0x87e   : > { %v4246_v8 = vpop.f32.mrf.mxu0  ;;  %v4248_v9 = vpop.f32.mrf.mxu1 }
 0x87f   : > { %1866 = vrot.lane.b32.xlu0 %v4248_v9, %s5048_s25  ;;  %1862 = vrot.lane.b32.xlu1 %v4246_v8, %s5048_s25 }
 0x880   : > { %v3077_v56 = vpop.f32.mrf.mxu1  ;;  %v4274_v10 = vpop.f32.mrf.mxu0 }
 0x883   : > { %1852 = vrot.lane.b32.xlu0 %v4246_v8, %s5055_s9  ;;  %1856 = vrot.lane.b32.xlu1 %v4248_v9, %s5055_s9 }
 0x887   : > { %1846 = vrot.lane.b32.xlu0 %v4248_v9, %s5020_s0  ;;  %1842 = vrot.lane.b32.xlu1 %v4246_v8, %s5020_s0 }
 0x88b   : > { %1832 = vrot.lane.b32.xlu0 %v4246_v8, %s5057_s23  ;;  %1836 = vrot.lane.b32.xlu1 %v4248_v9, %s5057_s23 }
 0x88f   : > { %1812 = vrot.lane.b32.xlu0 %v4246_v8, %s5026_s11  ;;  %1822 = vrot.lane.b32.xlu1 %v4246_v8, %s5058_s1 }
 0x893   : > { %1816 = vrot.lane.b32.xlu0 %v4248_v9, %s5026_s11  ;;  %1826 = vrot.lane.b32.xlu1 %v4248_v9, %s5058_s1 }
 0x897   : > { %1802 = vrot.lane.b32.xlu1 %v4246_v8, %s5063_s6  ;;  %1854 = vrot.lane.b32.xlu0 %v4274_v10, %s5055_s9 }
 0x89b   : > { %1790 = vrot.lane.b32.xlu0 %v4246_v8, %s5028_s2  ;;  %1864 = vrot.lane.b32.xlu1 %v4274_v10, %s5048_s25 }
 0x89f   : > { %1834 = vrot.lane.b32.xlu0 %v4274_v10, %s5057_s23  ;;  %1844 = vrot.lane.b32.xlu1 %v4274_v10, %s5020_s0 }
 0x8a3   : > { %1824 = vrot.lane.b32.xlu0 %v4274_v10, %s5058_s1  ;;  %1806 = vrot.lane.b32.xlu1 %v4248_v9, %s5063_s6 }
 0x8a7   : > { %1804 = vrot.lane.b32.xlu0 %v4274_v10, %s5063_s6  ;;  %1814 = vrot.lane.b32.xlu1 %v4274_v10, %s5026_s11 }
 0x8ab   : > { %1794 = vrot.lane.b32.xlu0 %v4248_v9, %s5028_s2  ;;  %1792 = vrot.lane.b32.xlu1 %v4274_v10, %s5028_s2 }
 0x8af   : > { %1874 = vperm.xlu1 %3294, %v1789_v11  }
 0x8f1   : > { %v1867_v14 = vpop.permute.xlu0 %1866  ;;  %v1863_v15 = vpop.permute.xlu1 %1862 }
 0x8f2   : > { %v1871_v16 = vsel %vm1868_vm9, %v1867_v14, %v1863_v15 }
 0x8f3   : > { %3079 = vmatpush3.msra.mxu1 %v1871_v16 }
 0x8f4   : > { %3080 = vmatprep.subr.mxu1 %v3660_v4 }
 0x8f5   : > { %v1853_v17 = vpop.permute.xlu0 %1852  ;;  %v1857_v18 = vpop.permute.xlu1 %1856 }
 0x8f6   : > { %v1861_v19 = vsel %vm1858_vm10, %v1857_v18, %v1853_v17 }
 0x8f7   : > { %3081 = vmatpush3.msra.mxu1 %v1861_v19  ;;  %v4390_v19 = vrot.slane %v1787_v0, %v2033_v12  ;;  %v2049_v12 = vld [vmem:[%s5121_s17] sm:$0xff]  ;;  %s5142_s17 = smov 127  }
 0x8f8   : > { %3082 = vmatprep.subr.mxu1 %v3660_v4 }
 0x8f9   : > { %v1847_v20 = vpop.permute.xlu0 %1846  ;;  %v1843_v21 = vpop.permute.xlu1 %1842 }
 0x8fa   : > { %v1851_v22 = vsel %vm1848_vm11, %v1847_v20, %v1843_v21 }
 0x8fb   : > { %3083 = vmatpush3.msra.mxu1 %v1851_v22 }
 0x8fc   : > { %3084 = vmatprep.subr.mxu1 %v3660_v4 }
 0x8fd   : > { %v1833_v23 = vpop.permute.xlu0 %1832  ;;  %v1837_v24 = vpop.permute.xlu1 %1836 }
 0x8fe   : > { %v1841_v25 = vsel %vm1838_vm12, %v1837_v24, %v1833_v23 }
 0x8ff   : > { %3085 = vmatpush3.msra.mxu1 %v1841_v25 }
 0x900   : > { %3086 = vmatprep.subr.mxu1 %v3660_v4 }
 0x901   : > { %v1813_v26 = vpop.permute.xlu0 %1812  ;;  %3087 = vmatpush3.msra.mxu1 %v4248_v9  ;;  %v1823_v27 = vpop.permute.xlu1 %1822 }
 0x902   : > { %3088 = vmatprep.subr.mxu1 %v3660_v4 }
 0x905   : > { %v1817_v28 = vpop.permute.xlu0 %1816  ;;  %v1827_v29 = vpop.permute.xlu1 %1826 }
 0x906   : > { %v1831_v48 = vsel %vm1828_vm13, %v1827_v29, %v1823_v27  ;;  %v1821_v51 = vsel %vm1818_vm14, %v1817_v28, %v1813_v26 }
 0x909   : > { %v1803_v30 = vpop.permute.xlu1 %1802  ;;  %v1855_v31 = vpop.permute.xlu0 %1854 }
 0x90a   : > { %v1859_v6 = vsel %vm1858_vm10, %v1855_v31, %v1857_v18  ;;  %v1860_v37 = vsel %vm1858_vm10, %v1853_v17, %v1855_v31 }
 0x90d   : > { %v1791_v32 = vpop.permute.xlu0 %1790  ;;  %v1865_v33 = vpop.permute.xlu1 %1864 }
 0x90e   : > { %v1869_v34 = vsel %vm1868_vm9, %v1865_v33, %v1867_v14  ;;  %v1870_v35 = vsel %vm1868_vm9, %v1863_v15, %v1865_v33 }
 0x90f   : > { %1894 = vmatprep.subr.mxu0 %v1869_v34 }
 0x910   : > { %1895 = vmatpush1.msra.mxu0 %v1870_v35 }
 0x911   : > { %v1835_v36 = vpop.permute.xlu0 %1834  ;;  %1896 = vmatprep.subr.mxu0 %v1859_v6  ;;  %v1845_v5 = vpop.permute.xlu1 %1844 }
 0x912   : > { %1897 = vmatpush1.msra.mxu0 %v1860_v37  ;;  %v1849_v38 = vsel %vm1848_vm11, %v1845_v5, %v1847_v20  ;;  %v1850_v39 = vsel %vm1848_vm11, %v1843_v21, %v1845_v5  ;;  %v1839_v40 = vsel %vm1838_vm12, %v1835_v36, %v1837_v24  ;;  %v1840_v43 = vsel %vm1838_vm12, %v1833_v23, %v1835_v36 }
 0x913   : > { %1898 = vmatprep.subr.mxu0 %v1849_v38  ;;  %v2037_v24 = vsub.s32 1, %v2032_v62 }
 0x914   : > { %1899 = vmatpush1.msra.mxu0 %v1850_v39 }
 0x915   : > { %v1825_v41 = vpop.permute.xlu0 %1824  ;;  %1900 = vmatprep.subr.mxu0 %v1839_v40  ;;  %v1807_v42 = vpop.permute.xlu1 %1806 }
 0x916   : > { %1901 = vmatpush1.msra.mxu0 %v1840_v43  ;;  %v1829_v44 = vsel %vm1828_vm13, %v1825_v41, %v1827_v29  ;;  %v1830_v45 = vsel %vm1828_vm13, %v1823_v27, %v1825_v41  ;;  %v1811_v57 = vsel %vm1808_vm15, %v1807_v42, %v1803_v30  ;;  %v2050_v29 = vld [vmem:[%s5120_s18] sm:$0xff]  ;;  %s5143_s18 = smov 1  }
 0x917   : > { %1902 = vmatprep.subr.mxu0 %v4274_v10  ;;  %3089 = vmatpush3.msra.mxu1 %v1829_v44 }
 0x918   : > { %1903 = vmatpush1.msra.mxu0 %v4246_v8  ;;  %3090 = vmatprep.subr.mxu1 %v3660_v4 }
 0x919   : > { %v1805_v46 = vpop.permute.xlu0 %1804  ;;  %1904 = vmatprep.subr.mxu0 %v1830_v45  ;;  %v1815_v47 = vpop.permute.xlu1 %1814 }
 0x91a   : > { %1905 = vmatpush1.msra.mxu0 %v1831_v48  ;;  %v1820_v49 = vsel %vm1818_vm14, %v1813_v26, %v1815_v47  ;;  %v1819_v50 = vsel %vm1818_vm14, %v1815_v47, %v1817_v28  ;;  %v1810_v52 = vsel %vm1808_vm15, %v1803_v30, %v1805_v46  ;;  %v1809_v53 = vsel %vm1808_vm15, %v1805_v46, %v1807_v42 }
 0x91b   : > { %1906 = vmatprep.subr.mxu0 %v1820_v49  ;;  %3091 = vmatpush3.msra.mxu1 %v1819_v50  ;;  %v4407_v26 = vrot.slane %v1787_v0, %v2037_v24 }
 0x91c   : > { %1907 = vmatpush1.msra.mxu0 %v1821_v51  ;;  %3092 = vmatprep.subr.mxu1 %v3660_v4 }
 0x91d   : > { %v1795_v54 = vpop.permute.xlu0 %1794  ;;  %1908 = vmatprep.subr.mxu0 %v1810_v52  ;;  %3093 = vmatpush3.msra.mxu1 %v1809_v53  ;;  %v1793_v55 = vpop.permute.xlu1 %1792 }
 0x91e   : > { %1909 = vmatpush1.msra.mxu0 %v1811_v57  ;;  %3094 = vmatprep.subr.mxu1 %v3660_v4  ;;  %v1800_v59 = vsel %vm1798_vm0, %v1791_v32, %v1793_v55  ;;  %v1799_v60 = vsel %vm1798_vm0, %v1793_v55, %v1795_v54  ;;  %v1801_v61 = vsel %vm1798_vm0, %v1795_v54, %v1791_v32 }
 0x91f   : > { %1910 = vmatprep.subr.mxu0 %v1800_v59  ;;  %3095 = vmatpush3.msra.mxu1 %v1799_v60 }
 0x920   : > { %1911 = vmatpush1.msra.mxu0 %v1801_v61  ;;  %3097 = vmatmul.mubr.msk.f32.vlgmr.msra.gmra.mxu1 %vm1520_vm7, %v1788_v58 }
 0x921   : > { %2892 = vmatmul.mubr.msk.f32.vlgmr.msra.gmra.mxu0 %vm1520_vm7, %v1788_v58  ;;  %3099 = vmatprep.subr.mxu1 %v3660_v4 }
 0x922   : > { %3117 = vmatprep.mubr.msk.f32.mxu1 %vm3670_vm5, %v3660_v4  ;;  %2195 = vmatprep.mubr.f32.mxu0 %v3660_v4 }
 0x92a   : > { %v1875_v1 = vpop.permute.xlu1 %1874 }
 0x9e0   : > { %v2017_v2 = vpop.f32.mrf.mxu1 }
 0x9e1   : > { %v2018_v3 = vadd.f32 %v2017_v2, %v1875_v1  ;;  %v1946_v14 = vpop.f32.mrf.mxu0 }
 0x9e2   : > { %v3098_v56 = vpop.f32.mrf.mxu1  ;;  %v1947_v17 = vadd.f32 %v1946_v14, %v1875_v1 }
 0x9e3   : > { %vm2023_vm1 = vcmp.ge.f32.partialorder %v2018_v3, 0.0  ;;  %v2026_v11 = vmul.f32 0.2, %v2018_v3  ;;  %v1948_v21 = vpop.f32.mrf.mxu0 }
 0x9e4   : > { %v2024_v18 = vmul.f32 0.2, %v1947_v17  ;;  %vm2021_vm2 = vcmp.ge.f32.partialorder %v1947_v17, 0.0  ;;  %v1949_v23 = vadd.f32 %v1948_v21, %v1875_v1 }
 0x9e5   : > { %v2029_v15 = vsel %vm2023_vm1, %v2018_v3, %v2026_v11  ;;  %vm2392_vm1 = vcmp.lt.s32.totalorder %v4301_v13, 2 }
 0x9e6   : > { %v4380_v16 = vmul.f32 %v4377_v7, %v2029_v15  ;;  %v2027_v20 = vsel %vm2021_vm2, %v1947_v17, %v2024_v18  ;;  %v2025_v25 = vmul.f32 0.2, %v1949_v23  ;;  %vm2022_vm3 = vcmp.ge.f32.partialorder %v1949_v23, 0.0 }
 0x9e7   : > { %v4397_v22 = vmul.f32 %v4390_v19, %v2027_v20  ;;  %vm2305_vm2 = vcmp.lt.s32.totalorder %v4301_v13, 37 }
 0x9e8   : > { %2109 = vrot.lane.b32.xlu0 %v4380_v16, %s5055_s9  ;;  %2118 = vrot.lane.b32.xlu1 %v4380_v16, %s5048_s25  ;;  %v2028_v27 = vsel %vm2022_vm3, %v1949_v23, %v2025_v25  ;;  %vm2295_vm3 = vcmp.lt.s32.totalorder %v4301_v13, 38 }
 0x9e9   : > { %v4414_v28 = vmul.f32 %v4407_v26, %v2028_v27 }
 0x9ec   : > { %2091 = vrot.lane.b32.xlu0 %v4380_v16, %s5057_s23  ;;  %2100 = vrot.lane.b32.xlu1 %v4380_v16, %s5020_s0 }
 0x9f0   : > { %2082 = vrot.lane.b32.xlu0 %v4380_v16, %s5058_s1  ;;  %2073 = vrot.lane.b32.xlu1 %v4380_v16, %s5026_s11 }
 0x9f4   : > { %2105 = vrot.lane.b32.xlu1 %v4397_v22, %s5055_s9  ;;  %2114 = vrot.lane.b32.xlu0 %v4397_v22, %s5048_s25 }
 0x9f8   : > { %2087 = vrot.lane.b32.xlu1 %v4397_v22, %s5057_s23  ;;  %2096 = vrot.lane.b32.xlu0 %v4397_v22, %s5020_s0 }
 0x9fc   : > { %2069 = vrot.lane.b32.xlu1 %v4397_v22, %s5026_s11  ;;  %2078 = vrot.lane.b32.xlu0 %v4397_v22, %s5058_s1 }
 0xa00   : > { %2107 = vrot.lane.b32.xlu1 %v4414_v28, %s5055_s9  ;;  %2060 = vrot.lane.b32.xlu0 %v4397_v22, %s5063_s6 }
 0xa04   : > { %2051 = vrot.lane.b32.xlu1 %v4397_v22, %s5028_s2  ;;  %2116 = vrot.lane.b32.xlu0 %v4414_v28, %s5048_s25 }
 0xa08   : > { %2089 = vrot.lane.b32.xlu1 %v4414_v28, %s5057_s23  ;;  %2098 = vrot.lane.b32.xlu0 %v4414_v28, %s5020_s0  ;;  %s5030_s0 = smov 16  }
 0xa0c   : > { %2080 = vrot.lane.b32.xlu1 %v4414_v28, %s5058_s1  ;;  %2064 = vrot.lane.b32.xlu0 %v4380_v16, %s5063_s6 }
 0xa10   : > { %2062 = vrot.lane.b32.xlu1 %v4414_v28, %s5063_s6  ;;  %2071 = vrot.lane.b32.xlu0 %v4414_v28, %s5026_s11 }
 0xa14   : > { %2055 = vrot.lane.b32.xlu1 %v4380_v16, %s5028_s2  ;;  %2053 = vrot.lane.b32.xlu0 %v4414_v28, %s5028_s2 }
 0xa18   : > { %2125 = vperm.xlu0 %3293, %v2050_v29  }
 0xa5a   : > { %v2110_v30 = vpop.permute.xlu0 %2109  ;;  %v2119_v31 = vpop.permute.xlu1 %2118 }
 0xa5e   : > { %v2092_v32 = vpop.permute.xlu0 %2091  ;;  %v2101_v33 = vpop.permute.xlu1 %2100 }
 0xa62   : > { %v2083_v34 = vpop.permute.xlu0 %2082  ;;  %v2074_v35 = vpop.permute.xlu1 %2073 }
 0xa66   : > { %v2106_v6 = vpop.permute.xlu1 %2105  ;;  %v2115_v36 = vpop.permute.xlu0 %2114 }
 0xa67   : > { %v2122_v5 = vsel %vm1868_vm9, %v2119_v31, %v2115_v36  ;;  %v2113_v37 = vsel %vm1858_vm10, %v2110_v30, %v2106_v6 }
 0xa68   : > { %3100 = vmatpush3.msra.mxu1 %v2122_v5 }
 0xa69   : > { %3101 = vmatprep.subr.mxu1 %v3660_v4 }
 0xa6a   : > { %v2088_v38 = vpop.permute.xlu1 %2087  ;;  %3102 = vmatpush3.msra.mxu1 %v2113_v37  ;;  %v2097_v39 = vpop.permute.xlu0 %2096 }
 0xa6b   : > { %v2104_v40 = vsel %vm1848_vm11, %v2101_v33, %v2097_v39  ;;  %3103 = vmatprep.subr.mxu1 %v3660_v4  ;;  %v2095_v41 = vsel %vm1838_vm12, %v2092_v32, %v2088_v38 }
 0xa6c   : > { %3104 = vmatpush3.msra.mxu1 %v2104_v40 }
 0xa6d   : > { %3105 = vmatprep.subr.mxu1 %v3660_v4 }
 0xa6e   : > { %v2070_v42 = vpop.permute.xlu1 %2069  ;;  %3106 = vmatpush3.msra.mxu1 %v2095_v41  ;;  %v2079_v43 = vpop.permute.xlu0 %2078 }
 0xa6f   : > { %3107 = vmatprep.subr.mxu1 %v3660_v4  ;;  %v2086_v63 = vsel %vm1828_vm13, %v2083_v34, %v2079_v43  ;;  %v2077_v56 = vsel %vm1818_vm14, %v2074_v35, %v2070_v42 }
 0xa70   : > { %3108 = vmatpush3.msra.mxu1 %v4380_v16 }
 0xa71   : > { %3109 = vmatprep.subr.mxu1 %v3660_v4 }
 0xa72   : > { %v2108_v44 = vpop.permute.xlu1 %2107  ;;  %v2061_v45 = vpop.permute.xlu0 %2060 }
 0xa73   : > { %v2111_v50 = vsel %vm1858_vm10, %v2108_v44, %v2110_v30  ;;  %v2112_v51 = vsel %vm1858_vm10, %v2106_v6, %v2108_v44 }
 0xa76   : > { %v2052_v46 = vpop.permute.xlu1 %2051  ;;  %v2117_v47 = vpop.permute.xlu0 %2116 }
 0xa77   : > { %v2121_v48 = vsel %vm1868_vm9, %v2115_v36, %v2117_v47  ;;  %v2120_v49 = vsel %vm1868_vm9, %v2117_v47, %v2119_v31 }
 0xa78   : > { %2145 = vmatprep.subr.mxu0 %v2120_v49 }
 0xa79   : > { %2146 = vmatpush1.msra.mxu0 %v2121_v48 }
 0xa7a   : > { %v2090_v52 = vpop.permute.xlu1 %2089  ;;  %2147 = vmatprep.subr.mxu0 %v2111_v50  ;;  %v2099_v53 = vpop.permute.xlu0 %2098 }
 0xa7b   : > { %v2103_v54 = vsel %vm1848_vm11, %v2097_v39, %v2099_v53  ;;  %2148 = vmatpush1.msra.mxu0 %v2112_v51  ;;  %v2102_v55 = vsel %vm1848_vm11, %v2099_v53, %v2101_v33  ;;  %v2093_v57 = vsel %vm1838_vm12, %v2090_v52, %v2092_v32  ;;  %v2094_v58 = vsel %vm1838_vm12, %v2088_v38, %v2090_v52  ;;  %v2288_v51 = vld [vmem:[%s5010_s21] sm:$0x7] }
 0xa7c   : > { %2149 = vmatprep.subr.mxu0 %v2102_v55 }
 0xa7d   : > { %2150 = vmatpush1.msra.mxu0 %v2103_v54 }
 0xa7e   : > { %v2081_v59 = vpop.permute.xlu1 %2080  ;;  %2151 = vmatprep.subr.mxu0 %v2093_v57  ;;  %v2065_v60 = vpop.permute.xlu0 %2064 }
 0xa7f   : > { %v2084_v61 = vsel %vm1828_vm13, %v2081_v59, %v2083_v34  ;;  %2152 = vmatpush1.msra.mxu0 %v2094_v58  ;;  %v2085_v62 = vsel %vm1828_vm13, %v2079_v43, %v2081_v59  ;;  %v2068_v15 = vsel %vm1808_vm15, %v2065_v60, %v2061_v45  ;;  %v4672_v43 = vld [vmem:[%s5009_s20] sm:$0x77] }
 0xa80   : > { %2153 = vmatprep.subr.mxu0 %v4414_v28  ;;  %3110 = vmatpush3.msra.mxu1 %v2084_v61  ;;  %v2527_v44 = vcombine.high %v4672_v43, %v4672_v43 }
 0xa81   : > { %2154 = vmatpush1.msra.mxu0 %v4397_v22  ;;  %3111 = vmatprep.subr.mxu1 %v3660_v4 }
 0xa82   : > { %v2063_v0 = vpop.permute.xlu1 %2062  ;;  %2155 = vmatprep.subr.mxu0 %v2085_v62  ;;  %v2072_v1 = vpop.permute.xlu0 %2071 }
 0xa83   : > { %v2075_v2 = vsel %vm1818_vm14, %v2072_v1, %v2074_v35  ;;  %2156 = vmatpush1.msra.mxu0 %v2086_v63  ;;  %v2076_v3 = vsel %vm1818_vm14, %v2070_v42, %v2072_v1  ;;  %v2066_v11 = vsel %vm1808_vm15, %v2063_v0, %v2065_v60  ;;  %v2067_v14 = vsel %vm1808_vm15, %v2061_v45, %v2063_v0 }
 0xa84   : > { %2157 = vmatprep.subr.mxu0 %v2076_v3  ;;  %3112 = vmatpush3.msra.mxu1 %v2075_v2 }
 0xa85   : > { %2158 = vmatpush1.msra.mxu0 %v2077_v56  ;;  %3113 = vmatprep.subr.mxu1 %v3660_v4 }
 0xa86   : > { %v2056_v16 = vpop.permute.xlu1 %2055  ;;  %2159 = vmatprep.subr.mxu0 %v2067_v14  ;;  %3114 = vmatpush3.msra.mxu1 %v2066_v11  ;;  %v2054_v17 = vpop.permute.xlu0 %2053 }
 0xa87   : > { %v2059_v18 = vsel %vm1798_vm0, %v2056_v16, %v2052_v46  ;;  %v2057_v20 = vsel %vm1798_vm0, %v2054_v17, %v2056_v16  ;;  %2160 = vmatpush1.msra.mxu0 %v2068_v15  ;;  %3115 = vmatprep.subr.mxu1 %v3660_v4  ;;  %v2058_v21 = vsel %vm1798_vm0, %v2052_v46, %v2054_v17 }
 0xa88   : > { %2161 = vmatprep.subr.mxu0 %v2058_v21  ;;  %3116 = vmatpush3.msra.mxu1 %v2057_v20 }
 0xa89   : > { %2162 = vmatpush1.msra.mxu0 %v2059_v18  ;;  %3118 = vmatmul.mubr.msk.f32.vlgmr.msra.gmra.mxu1 %vm1520_vm7, %v2049_v12 }
 0xa8a   : > { %2894 = vmatmul.mubr.msk.f32.vlgmr.msra.gmra.mxu0 %vm1520_vm7, %v2049_v12  ;;  %2601 = vmatprep.subr.mxu1 %v3660_v4 }
 0xa8b   : > { %2897 = vmatprep.mubr.msk.f32.mxu1 %vm1520_vm7, %v2527_v44  ;;  %2896 = vmatprep.mubr.msk.f32.mxu0 %vm1520_vm7, %v2527_v44  ;;  %vm2430_vm7 = vcmp.lt.s32.totalorder %v4301_v13, 112 }
 0xa93   : > { %v4508_v22 = vpop.permute.xlu0 %2125 }
 0xb49   : > { %v2268_v23 = vpop.f32.mrf.mxu1 }
 0xb4a   : > { %v2269_v24 = vadd.f32 %v2268_v23, %v4508_v22 }
 0xb4b   : > { %v3119_v25 = vpop.f32.mrf.mxu1 }
 0xb4c   : > { %v2274_v27 = vadd.f32 %v2269_v24, %v4248_v9  ;;  %v2197_v9 = vpop.f32.mrf.mxu0 }
 0xb4e   : > { %vm2277_vm4 = vcmp.ge.f32.partialorder %v2274_v27, 0.0  ;;  %v2280_v28 = vmul.f32 0.2, %v2274_v27 }
 0xb50   : > { %v2283_v29 = vsel %vm2277_vm4, %v2274_v27, %v2280_v28  ;;  %vm2517_vm4 = vcmp.lt.s32.totalorder %v4301_v13, 90 }
 0xb51   : > { %v4513_v30 = vmul.f32 %v2283_v29, %v4377_v7  ;;  %v2198_v7 = vadd.f32 %v2197_v9, %v4508_v22 }
 0xb53   : > { %2418 = vrot.lane.b32.xlu1 %v4513_v30, %s5022_s24  ;;  %2428 = vrot.lane.b32.xlu0 %v4513_v30, %s5054_s27  ;;  %s5032_s24 = smov 34   ;;  %v2272_v31 = vadd.f32 %v2198_v7, %v4246_v8 }
 0xb55   : > { %v2278_v32 = vmul.f32 0.2, %v2272_v31  ;;  %vm2275_vm5 = vcmp.ge.f32.partialorder %v2272_v31, 0.0 }
 0xb57   : > { %2390 = vrot.lane.b32.xlu1 %v4513_v30, %s5024_s5  ;;  %2409 = vrot.lane.b32.xlu0 %v4513_v30, %s5057_s23  ;;  %s5034_s5 = smov 36   ;;  %v2281_v33 = vsel %vm2275_vm5, %v2272_v31, %v2278_v32  ;;  %vm2507_vm5 = vcmp.lt.s32.totalorder %v4301_v13, 91 }
 0xb58   : > { %v4562_v8 = vmul.f32 %v2281_v33, %v4390_v19  ;;  %v2199_v19 = vpop.f32.mrf.mxu0 }
 0xb59   : > { %v2200_v34 = vadd.f32 %v2199_v19, %v4508_v22 }
 0xb5b   : > { %2371 = vrot.lane.b32.xlu1 %v4513_v30, %s5026_s11  ;;  %2400 = vrot.lane.b32.xlu0 %v4513_v30, %s5058_s1  ;;  %s5036_s11 = smov 20   ;;  %v2273_v35 = vadd.f32 %v2200_v34, %v4274_v10 }
 0xb5d   : > { %v2279_v6 = vmul.f32 0.2, %v2273_v35  ;;  %vm2276_vm6 = vcmp.ge.f32.partialorder %v2273_v35, 0.0 }
 0xb5f   : > { %2353 = vrot.lane.b32.xlu1 %v4513_v30, %s5028_s2  ;;  %2380 = vrot.lane.b32.xlu0 %v4513_v30, %s5030_s0  ;;  %s5038_s2 = smov 38   ;;  %s5040_s0 = smov 35   ;;  %v2282_v36 = vsel %vm2276_vm6, %v2273_v35, %v2279_v6  ;;  %vm2497_vm6 = vcmp.lt.s32.totalorder %v4301_v13, 92 }
 0xb60   : > { %v4615_v10 = vmul.f32 %v2282_v36, %v4407_v26 }
 0xb63   : > { %2333 = vrot.lane.b32.xlu1 %v4513_v30, %s5032_s24  ;;  %2362 = vrot.lane.b32.xlu0 %v4513_v30, %s5063_s6  ;;  %s5042_s24 = smov 90  }
 0xb67   : > { %2313 = vrot.lane.b32.xlu1 %v4513_v30, %s5034_s5  ;;  %2343 = vrot.lane.b32.xlu0 %v4513_v30, %s5036_s11  ;;  %s5044_s5 = smov 37   ;;  %s5059_s11 = smov 92  }
 0xb6b   : > { %2293 = vrot.lane.b32.xlu1 %v4513_v30, %s5038_s2  ;;  %2323 = vrot.lane.b32.xlu0 %v4513_v30, %s5040_s0  ;;  %s5061_s2 = smov 91   ;;  %s5046_s0 = smov 94  }
 0xb6f   : > { %2515 = vrot.lane.b32.xlu1 %v4513_v30, %s5042_s24  ;;  %2303 = vrot.lane.b32.xlu0 %v4513_v30, %s5044_s5  ;;  %s5052_s24 = smov 93   ;;  %s5050_s5 = smov 108  }
 0xb73   : > { %2495 = vrot.lane.b32.xlu1 %v4513_v30, %s5059_s11  ;;  %2505 = vrot.lane.b32.xlu0 %v4513_v30, %s5061_s2  ;;  %s5130_s11 = smov 36   ;;  %s5131_s2 = smov 37  }
 0xb77   : > { %2475 = vrot.lane.b32.xlu1 %v4513_v30, %s5046_s0  ;;  %2485 = vrot.lane.b32.xlu0 %v4513_v30, %s5052_s24  ;;  %s5122_s0 = smov 126   ;;  %s5125_s24 = smov 17  }
 0xb7b   : > { %2456 = vrot.lane.b32.xlu1 %v4513_v30, %s5048_s25  ;;  %2465 = vrot.lane.b32.xlu0 %v4513_v30, %s5050_s5  ;;  %s5123_s25 = smov 2   ;;  %s5124_s5 = smov 16  }
 0xb7f   : > { %2447 = vrot.lane.b32.xlu0 %v4513_v30, %s5055_s9  ;;  %2424 = vrot.lane.b32.xlu1 %v4562_v8, %s5054_s27  ;;  %s5126_s27 = smov 19   ;;  %s5127_s9 = smov 20  }
 0xb83   : > { %2414 = vrot.lane.b32.xlu0 %v4562_v8, %s5122_s0  ;;  %2405 = vrot.lane.b32.xlu1 %v4562_v8, %s5057_s23  ;;  %s5128_s23 = smov 34  }
 0xb87   : > { %2396 = vrot.lane.b32.xlu0 %v4562_v8, %s5058_s1  ;;  %2386 = vrot.lane.b32.xlu1 %v4562_v8, %s5123_s25  ;;  %s5129_s1 = smov 35  }
 0xb8b   : > { %2376 = vrot.lane.b32.xlu0 %v4562_v8, %s5124_s5  ;;  %2367 = vrot.lane.b32.xlu1 %v4562_v8, %s5125_s24 }
 0xb8f   : > { %2358 = vrot.lane.b32.xlu0 %v4562_v8, %s5063_s6  ;;  %2349 = vrot.lane.b32.xlu1 %v4562_v8, %s5126_s27  ;;  %s5132_s6 = smov 38  }
 0xb93   : > { %2339 = vrot.lane.b32.xlu0 %v4562_v8, %s5127_s9  ;;  %2329 = vrot.lane.b32.xlu1 %v4562_v8, %s5128_s23 }
 0xb97   : > { %2319 = vrot.lane.b32.xlu0 %v4562_v8, %s5129_s1  ;;  %2309 = vrot.lane.b32.xlu1 %v4562_v8, %s5130_s11 }
 0xb9b   : > { %2299 = vrot.lane.b32.xlu0 %v4562_v8, %s5131_s2  ;;  %2289 = vrot.lane.b32.xlu1 %v4562_v8, %s5132_s6 }
 0xb9f   : > { %2511 = vrot.lane.b32.xlu0 %v4562_v8, %s5133_s4  ;;  %2501 = vrot.lane.b32.xlu1 %v4562_v8, %s5134_s7 }
 0xba3   : > { %2491 = vrot.lane.b32.xlu0 %v4562_v8, %s5135_s8  ;;  %2481 = vrot.lane.b32.xlu1 %v4562_v8, %s5136_s10 }
 0xba7   : > { %2471 = vrot.lane.b32.xlu0 %v4562_v8, %s5137_s12  ;;  %2461 = vrot.lane.b32.xlu1 %v4562_v8, %s5138_s13 }
 0xbab   : > { %2452 = vrot.lane.b32.xlu0 %v4562_v8, %s5139_s14  ;;  %2443 = vrot.lane.b32.xlu1 %v4562_v8, %s5140_s15 }
 0xbaf   : > { %2416 = vrot.lane.b32.xlu0 %v4615_v10, %s5122_s0  ;;  %2426 = vrot.lane.b32.xlu1 %v4615_v10, %s5141_s16  ;;  %s5144_s16 = smov 18  }
 0xbb3   : > { %2388 = vrot.lane.b32.xlu0 %v4615_v10, %s5123_s25  ;;  %2407 = vrot.lane.b32.xlu1 %v4615_v10, %s5142_s17 }
 0xbb7   : > { %2369 = vrot.lane.b32.xlu0 %v4615_v10, %s5125_s24  ;;  %2398 = vrot.lane.b32.xlu1 %v4615_v10, %s5143_s18 }
 0xbbb   : > { %2351 = vrot.lane.b32.xlu0 %v4615_v10, %s5126_s27  ;;  %2378 = vrot.lane.b32.xlu1 %v4615_v10, %s5124_s5 }
 0xbbf   : > { %2331 = vrot.lane.b32.xlu0 %v4615_v10, %s5128_s23  ;;  %2360 = vrot.lane.b32.xlu1 %v4615_v10, %s5144_s16 }
 0xbc3   : > { %2311 = vrot.lane.b32.xlu0 %v4615_v10, %s5130_s11  ;;  %2341 = vrot.lane.b32.xlu1 %v4615_v10, %s5127_s9 }
 0xbc5   : > { %v4641_v26 = vpop.permute.xlu1 %2418  ;;  %v4643_v5 = vpop.permute.xlu0 %2428 }
 0xbc7   : > { %2291 = vrot.lane.b32.xlu0 %v4615_v10, %s5132_s6  ;;  %2321 = vrot.lane.b32.xlu1 %v4615_v10, %s5129_s1 }
 0xbc9   : > { %v4649_v37 = vpop.permute.xlu1 %2390  ;;  %v4651_v38 = vpop.permute.xlu0 %2409 }
 0xbcb   : > { %2513 = vrot.lane.b32.xlu0 %v4615_v10, %s5133_s4  ;;  %2301 = vrot.lane.b32.xlu1 %v4615_v10, %s5131_s2 }
 0xbcd   : > { %v4657_v39 = vpop.permute.xlu1 %2371  ;;  %v4659_v40 = vpop.permute.xlu0 %2400 }
 0xbcf   : > { %2493 = vrot.lane.b32.xlu0 %v4615_v10, %s5135_s8  ;;  %2503 = vrot.lane.b32.xlu1 %v4615_v10, %s5134_s7  ;;  %s5145_s7 = smov 111  }
 0xbd1   : > { %v4665_v41 = vpop.permute.xlu1 %2353  ;;  %v4667_v42 = vpop.permute.xlu0 %2380 }
 0xbd3   : > { %2473 = vrot.lane.b32.xlu0 %v4615_v10, %s5137_s12  ;;  %2483 = vrot.lane.b32.xlu1 %v4615_v10, %s5136_s10  ;;  %s3120_s12 = smul.u32 12, %s5147_s30 }
 0xbd5   : > { %v4682_v45 = vpop.permute.xlu1 %2333  ;;  %v4684_v46 = vpop.permute.xlu0 %2362 }
 0xbd7   : > { %2454 = vrot.lane.b32.xlu0 %v4615_v10, %s5139_s14  ;;  %2463 = vrot.lane.b32.xlu1 %v4615_v10, %s5138_s13 }
 0xbd9   : > { %v4690_v47 = vpop.permute.xlu1 %2313  ;;  %v4692_v48 = vpop.permute.xlu0 %2343 }
 0xbdb   : > { %2436 = vrot.lane.b32.xlu0 %v4615_v10, %s5145_s7  ;;  %2445 = vrot.lane.b32.xlu1 %v4615_v10, %s5140_s15  ;;  %s840_s15 = scalar_lea.vmem %s5011_s22, %s3120_s12 }
 0xbdd   : > { %v4698_v49 = vpop.permute.xlu1 %2293  ;;  %v4700_v50 = vpop.permute.xlu0 %2323 }
 0xbdf   : > { %2434 = vrot.lane.b32.xlu0 %v4562_v8, %s5145_s7  ;;  %2438 = vrot.lane.b32.xlu1 %v4513_v30, %s5145_s7 }
 0xbe1   : > { %v4709_v52 = vpop.permute.xlu1 %2515  ;;  %v4711_v53 = vpop.permute.xlu0 %2303 }
 0xbe3   : > { %2523 = vperm.xlu1 %3294, %v2288_v51  }
 0xbe5   : > { %v4713_v54 = vpop.permute.xlu1 %2495  ;;  %v4715_v55 = vpop.permute.xlu0 %2505 }
 0xbe9   : > { %v4717_v57 = vpop.permute.xlu1 %2475  ;;  %v4719_v58 = vpop.permute.xlu0 %2485 }
 0xbed   : > { %v4721_v59 = vpop.permute.xlu1 %2456  ;;  %v4723_v60 = vpop.permute.xlu0 %2465 }
 0xbf1   : > { %v4726_v61 = vpop.permute.xlu0 %2447  ;;  %v2425_v62 = vpop.permute.xlu1 %2424 }
 0xbf2   : > { %v2433_v63 = vsel %vm2430_vm7, %v4643_v5, %v2425_v62 }
 0xbf3   : > { %2602 = vmatpush1.msra.mxu1 %v2433_v63 }
 0xbf4   : > { %2603 = vmatprep.subr.mxu1 %v3660_v4 }
 0xbf5   : > { %v2415_v0 = vpop.permute.xlu0 %2414  ;;  %v2406_v1 = vpop.permute.xlu1 %2405 }
 0xbf6   : > { %v2423_v2 = vsel %vm2420_vm8, %v4641_v26, %v2415_v0  ;;  %v2413_v3 = vsel %vm1838_vm12, %v4651_v38, %v2406_v1 }
 0xbf7   : > { %2604 = vmatpush1.msra.mxu1 %v2423_v2 }
 0xbf8   : > { %2605 = vmatprep.subr.mxu1 %v3660_v4 }
 0xbf9   : > { %v2397_v56 = vpop.permute.xlu0 %2396  ;;  %2606 = vmatpush1.msra.mxu1 %v2413_v3  ;;  %v2387_v11 = vpop.permute.xlu1 %2386 }
 0xbfa   : > { %2607 = vmatprep.subr.mxu1 %v3660_v4 }
 0xbfb   : > { %2608 = vmatpush1.msra.mxu1 %v4513_v30 }
 0xbfc   : > { %2609 = vmatprep.subr.mxu1 %v3660_v4 }
 0xbfd   : > { %v2377_v14 = vpop.permute.xlu0 %2376  ;;  %v4743_v15 = vpop.permute.xlu1 %2367 }
 0xc01   : > { %v4745_v16 = vpop.permute.xlu0 %2358  ;;  %v4747_v17 = vpop.permute.xlu1 %2349 }
 0xc05   : > { %v4749_v12 = vpop.permute.xlu0 %2339  ;;  %v4751_v18 = vpop.permute.xlu1 %2329 }
 0xc09   : > { %v4753_v20 = vpop.permute.xlu0 %2319  ;;  %v4755_v21 = vpop.permute.xlu1 %2309 }
 0xc0d   : > { %v4757_v22 = vpop.permute.xlu0 %2299  ;;  %v4759_v23 = vpop.permute.xlu1 %2289 }
 0xc11   : > { %v4761_v24 = vpop.permute.xlu0 %2511  ;;  %v4763_v25 = vpop.permute.xlu1 %2501 }
 0xc15   : > { %v4765_v27 = vpop.permute.xlu0 %2491  ;;  %v4767_v28 = vpop.permute.xlu1 %2481 }
 0xc19   : > { %v4769_v29 = vpop.permute.xlu0 %2471  ;;  %v4771_v30 = vpop.permute.xlu1 %2461 }
 0xc1d   : > { %v4773_v9 = vpop.permute.xlu0 %2452  ;;  %v4775_v7 = vpop.permute.xlu1 %2443 }
 0xc21   : > { %v2417_v31 = vpop.permute.xlu0 %2416  ;;  %v2427_v32 = vpop.permute.xlu1 %2426 }
 0xc22   : > { %v2432_v33 = vsel %vm2430_vm7, %v2425_v62, %v2427_v32  ;;  %v2431_v19 = vsel %vm2430_vm7, %v2427_v32, %v4643_v5  ;;  %v2421_v34 = vsel %vm2420_vm8, %v2417_v31, %v4641_v26  ;;  %v2422_v35 = vsel %vm2420_vm8, %v2415_v0, %v2417_v31 }
 0xc23   : > { %2530 = vmatprep.subr.mxu0 %v2431_v19  ;;  %vm2487_vm7 = vcmp.lt.s32.totalorder %v4301_v13, 93  ;;  %vm2477_vm8 = vcmp.lt.s32.totalorder %v4301_v13, 94 }
 0xc24   : > { %2531 = vmatpush1.msra.mxu0 %v2432_v33 }
 0xc25   : > { %v2389_v6 = vpop.permute.xlu0 %2388  ;;  %2532 = vmatprep.subr.mxu0 %v2421_v34  ;;  %v2408_v36 = vpop.permute.xlu1 %2407 }
 0xc26   : > { %v2412_v44 = vsel %vm1838_vm12, %v2406_v1, %v2408_v36  ;;  %2533 = vmatpush1.msra.mxu0 %v2422_v35  ;;  %v2411_v5 = vsel %vm1838_vm12, %v2408_v36, %v4651_v38  ;;  %v2404_v38 = vsel %vm1828_vm13, %v4659_v40, %v2397_v56  ;;  %vm2382_vm12 = vcmp.lt.s32.totalorder %v4301_v13, 16 }
 0xc27   : > { %2534 = vmatprep.subr.mxu0 %v2411_v5  ;;  %v2394_v0 = vsel %vm2392_vm1, %v2387_v11, %v2389_v6  ;;  %v2395_v1 = vsel %vm2392_vm1, %v4649_v37, %v2387_v11  ;;  %v2375_v11 = vsel %vm1818_vm14, %v4657_v39, %v4743_v15 }
 0xc28   : > { %2535 = vmatpush1.msra.mxu0 %v2412_v44 }
 0xc29   : > { %v2370_v51 = vpop.permute.xlu0 %2369  ;;  %2536 = vmatprep.subr.mxu0 %v4615_v10  ;;  %v2399_v26 = vpop.permute.xlu1 %2398  ;;  %v2393_v10 = vsel %vm2392_vm1, %v2389_v6, %v4649_v37  ;;  %vm2467_vm1 = vcmp.lt.s32.totalorder %v4301_v13, 108 }
 0xc2a   : > { %v2402_v62 = vsel %vm1828_vm13, %v2399_v26, %v4659_v40  ;;  %2537 = vmatpush1.msra.mxu0 %v4562_v8  ;;  %v2403_v63 = vsel %vm1828_vm13, %v2397_v56, %v2399_v26  ;;  %v2385_v56 = vsel %vm2382_vm12, %v4667_v42, %v2377_v14  ;;  %v2373_v31 = vsel %vm1818_vm14, %v2370_v51, %v4657_v39 }
 0xc2b   : > { %2538 = vmatprep.subr.mxu0 %v2403_v63  ;;  %2610 = vmatpush1.msra.mxu1 %v2402_v62  ;;  %v2374_v37 = vsel %vm1818_vm14, %v4743_v15, %v2370_v51  ;;  %v2366_v39 = vsel %vm1808_vm15, %v4684_v46, %v4745_v16  ;;  %vm2345_vm13 = vcmp.lt.s32.totalorder %v4301_v13, 20  ;;  %vm2335_vm14 = vcmp.lt.s32.totalorder %v4301_v13, 34 }
 0xc2c   : > { %2539 = vmatpush1.msra.mxu0 %v2404_v38  ;;  %2611 = vmatprep.subr.mxu1 %v3660_v4  ;;  %v2348_v36 = vsel %vm2345_vm13, %v4692_v48, %v4749_v12  ;;  %v2338_v44 = vsel %vm2335_vm14, %v4682_v45, %v4751_v18 }
 0xc2d   : > { %v2352_v8 = vpop.permute.xlu0 %2351  ;;  %2540 = vmatprep.subr.mxu0 %v2394_v0  ;;  %2612 = vmatpush1.msra.mxu1 %v2393_v10  ;;  %v2379_v2 = vpop.permute.xlu1 %2378  ;;  %v2308_v10 = vsel %vm2305_vm2, %v4711_v53, %v4757_v22  ;;  %v2298_v0 = vsel %vm2295_vm3, %v4698_v49, %v4759_v23 }
 0xc2e   : > { %v2383_v3 = vsel %vm2382_vm12, %v2379_v2, %v4667_v42  ;;  %2541 = vmatpush1.msra.mxu0 %v2395_v1  ;;  %2613 = vmatprep.subr.mxu1 %v3660_v4  ;;  %v2384_v40 = vsel %vm2382_vm12, %v2377_v14, %v2379_v2  ;;  %v2355_v15 = vsel %vm1798_vm0, %v2352_v8, %v4665_v41 }
 0xc2f   : > { %2542 = vmatprep.subr.mxu0 %v2384_v40  ;;  %2614 = vmatpush1.msra.mxu1 %v2383_v3  ;;  %v2356_v19 = vsel %vm1798_vm0, %v4747_v17, %v2352_v8  ;;  %v2500_v40 = vsel %vm2497_vm6, %v4713_v54, %v4765_v27 }
 0xc30   : > { %2543 = vmatpush1.msra.mxu0 %v2385_v56  ;;  %2615 = vmatprep.subr.mxu1 %v3660_v4  ;;  %v2490_v56 = vsel %vm2487_vm7, %v4719_v58, %v4767_v28 }
 0xc31   : > { %v2332_v32 = vpop.permute.xlu0 %2331  ;;  %2544 = vmatprep.subr.mxu0 %v2374_v37  ;;  %2616 = vmatpush1.msra.mxu1 %v2373_v31  ;;  %v2361_v42 = vpop.permute.xlu1 %2360 }
 0xc32   : > { %v2364_v14 = vsel %vm1808_vm15, %v2361_v42, %v4684_v46  ;;  %2545 = vmatpush1.msra.mxu0 %v2375_v11  ;;  %2617 = vmatprep.subr.mxu1 %v3660_v4  ;;  %v2365_v33 = vsel %vm1808_vm15, %v4745_v16, %v2361_v42  ;;  %v2357_v46 = vsel %vm1798_vm0, %v4665_v41, %v4747_v17  ;;  %vm2325_vm15 = vcmp.lt.s32.totalorder %v4301_v13, 35 }
 0xc33   : > { %2546 = vmatprep.subr.mxu0 %v2365_v33  ;;  %2618 = vmatpush1.msra.mxu1 %v2364_v14  ;;  %v2336_v41 = vsel %vm2335_vm14, %v2332_v32, %v4682_v45  ;;  %v2337_v17 = vsel %vm2335_vm14, %v4751_v18, %v2332_v32  ;;  %vm2315_vm0 = vcmp.lt.s32.totalorder %v4301_v13, 36  ;;  %v2328_v26 = vsel %vm2325_vm15, %v4700_v50, %v4753_v20 }
 0xc34   : > { %2547 = vmatpush1.msra.mxu0 %v2366_v39  ;;  %2619 = vmatprep.subr.mxu1 %v3660_v4  ;;  %v2318_v62 = vsel %vm2315_vm0, %v4690_v47, %v4755_v21  ;;  %v2480_v11 = vsel %vm2477_vm8, %v4717_v57, %v4769_v29  ;;  %v2470_v32 = vsel %vm2467_vm1, %v4723_v60, %v4771_v30 }
 0xc35   : > { %v2312_v16 = vpop.permute.xlu0 %2311  ;;  %2548 = vmatprep.subr.mxu0 %v2356_v19  ;;  %2620 = vmatpush1.msra.mxu1 %v2355_v15  ;;  %v2342_v34 = vpop.permute.xlu1 %2341  ;;  %v2460_v33 = vsel %vm1868_vm9, %v4721_v59, %v4773_v9  ;;  %v2451_v39 = vsel %vm1858_vm10, %v4726_v61, %v4775_v7 }
 0xc36   : > { %v2346_v35 = vsel %vm2345_vm13, %v2342_v34, %v4692_v48  ;;  %2549 = vmatpush1.msra.mxu0 %v2357_v46  ;;  %2621 = vmatprep.subr.mxu1 %v3660_v4  ;;  %v2347_v6 = vsel %vm2345_vm13, %v4749_v12, %v2342_v34  ;;  %v2316_v45 = vsel %vm2315_vm0, %v2312_v16, %v4690_v47 }
 0xc37   : > { %2550 = vmatprep.subr.mxu0 %v2347_v6  ;;  %2622 = vmatpush1.msra.mxu1 %v2346_v35  ;;  %v2317_v18 = vsel %vm2315_vm0, %v4755_v21, %v2312_v16 }
 0xc38   : > { %2551 = vmatpush1.msra.mxu0 %v2348_v36  ;;  %2623 = vmatprep.subr.mxu1 %v3660_v4 }
 0xc39   : > { %v2292_v5 = vpop.permute.xlu0 %2291  ;;  %2552 = vmatprep.subr.mxu0 %v2337_v17  ;;  %2624 = vmatpush1.msra.mxu1 %v2336_v41  ;;  %v2322_v51 = vpop.permute.xlu1 %2321 }
 0xc3a   : > { %v2326_v48 = vsel %vm2325_vm15, %v2322_v51, %v4700_v50  ;;  %2553 = vmatpush1.msra.mxu0 %v2338_v44  ;;  %2625 = vmatprep.subr.mxu1 %v3660_v4  ;;  %v2327_v12 = vsel %vm2325_vm15, %v4753_v20, %v2322_v51  ;;  %v2296_v47 = vsel %vm2295_vm3, %v2292_v5, %v4698_v49 }
 0xc3b   : > { %2554 = vmatprep.subr.mxu0 %v2327_v12  ;;  %2626 = vmatpush1.msra.mxu1 %v2326_v48  ;;  %v2297_v21 = vsel %vm2295_vm3, %v4759_v23, %v2292_v5  ;;  %v2510_v23 = vsel %vm2507_vm5, %v4715_v55, %v4763_v25 }
 0xc3c   : > { %2555 = vmatpush1.msra.mxu0 %v2328_v26  ;;  %2627 = vmatprep.subr.mxu1 %v3660_v4 }
 0xc3d   : > { %v2514_v63 = vpop.permute.xlu0 %2513  ;;  %2556 = vmatprep.subr.mxu0 %v2317_v18  ;;  %2628 = vmatpush1.msra.mxu1 %v2316_v45  ;;  %v2302_v38 = vpop.permute.xlu1 %2301 }
 0xc3e   : > { %v2306_v50 = vsel %vm2305_vm2, %v2302_v38, %v4711_v53  ;;  %2557 = vmatpush1.msra.mxu0 %v2318_v62  ;;  %2629 = vmatprep.subr.mxu1 %v3660_v4  ;;  %v2307_v20 = vsel %vm2305_vm2, %v4757_v22, %v2302_v38  ;;  %v2520_v22 = vsel %vm2517_vm4, %v4709_v52, %v4761_v24 }
 0xc3f   : > { %2558 = vmatprep.subr.mxu0 %v2307_v20  ;;  %2630 = vmatpush1.msra.mxu1 %v2306_v50  ;;  %v2518_v8 = vsel %vm2517_vm4, %v2514_v63, %v4709_v52  ;;  %v2519_v49 = vsel %vm2517_vm4, %v4761_v24, %v2514_v63 }
 0xc40   : > { %2559 = vmatpush1.msra.mxu0 %v2308_v10  ;;  %2631 = vmatprep.subr.mxu1 %v3660_v4 }
 0xc41   : > { %v2494_v1 = vpop.permute.xlu0 %2493  ;;  %2560 = vmatprep.subr.mxu0 %v2297_v21  ;;  %2632 = vmatpush1.msra.mxu1 %v2296_v47  ;;  %v2504_v53 = vpop.permute.xlu1 %2503 }
 0xc42   : > { %2561 = vmatpush1.msra.mxu0 %v2298_v0  ;;  %2647 = vmatprep.subr.mxu1 %v3660_v4  ;;  %v2508_v52 = vsel %vm2507_vm5, %v2504_v53, %v4715_v55  ;;  %v2509_v24 = vsel %vm2507_vm5, %v4763_v25, %v2504_v53  ;;  %v2498_v55 = vsel %vm2497_vm6, %v2494_v1, %v4713_v54 }
 0xc43   : > { %2576 = vmatprep.subr.mxu0 %v2518_v8  ;;  %2648 = vmatpush2.msra.mxu1 %v2520_v22  ;;  %v2499_v25 = vsel %vm2497_vm6, %v4765_v27, %v2494_v1 }
 0xc44   : > { %2577 = vmatpush2.msra.mxu0 %v2519_v49  ;;  %2649 = vmatprep.subr.mxu1 %v3660_v4 }
 0xc45   : > { %v2474_v2 = vpop.permute.xlu0 %2473  ;;  %2578 = vmatprep.subr.mxu0 %v2508_v52  ;;  %2650 = vmatpush2.msra.mxu1 %v2510_v23  ;;  %v2484_v3 = vpop.permute.xlu1 %2483 }
 0xc46   : > { %2579 = vmatpush2.msra.mxu0 %v2509_v24  ;;  %2651 = vmatprep.subr.mxu1 %v3660_v4  ;;  %v2488_v54 = vsel %vm2487_vm7, %v2484_v3, %v4719_v58  ;;  %v2489_v27 = vsel %vm2487_vm7, %v4767_v28, %v2484_v3  ;;  %v2478_v58 = vsel %vm2477_vm8, %v2474_v2, %v4717_v57 }
 0xc47   : > { %2580 = vmatprep.subr.mxu0 %v2498_v55  ;;  %2652 = vmatpush2.msra.mxu1 %v2500_v40  ;;  %v2479_v28 = vsel %vm2477_vm8, %v4769_v29, %v2474_v2 }
 0xc48   : > { %2581 = vmatpush2.msra.mxu0 %v2499_v25  ;;  %2653 = vmatprep.subr.mxu1 %v3660_v4 }
 0xc49   : > { %v2455_v31 = vpop.permute.xlu0 %2454  ;;  %2582 = vmatprep.subr.mxu0 %v2488_v54  ;;  %2654 = vmatpush2.msra.mxu1 %v2490_v56  ;;  %v2464_v37 = vpop.permute.xlu1 %2463 }
 0xc4a   : > { %2583 = vmatpush2.msra.mxu0 %v2489_v27  ;;  %2655 = vmatprep.subr.mxu1 %v3660_v4  ;;  %v2468_v42 = vsel %vm2467_vm1, %v2464_v37, %v4723_v60  ;;  %v2469_v57 = vsel %vm2467_vm1, %v4771_v30, %v2464_v37  ;;  %v2458_v60 = vsel %vm1868_vm9, %v2455_v31, %v4721_v59 }
 0xc4b   : > { %2584 = vmatprep.subr.mxu0 %v2478_v58  ;;  %2656 = vmatpush2.msra.mxu1 %v2480_v11  ;;  %v2459_v30 = vsel %vm1868_vm9, %v4773_v9, %v2455_v31 }
 0xc4c   : > { %2585 = vmatpush2.msra.mxu0 %v2479_v28  ;;  %2657 = vmatprep.subr.mxu1 %v3660_v4 }
 0xc4d   : > { %v2437_v14 = vpop.permute.xlu0 %2436  ;;  %2586 = vmatprep.subr.mxu0 %v2468_v42  ;;  %2658 = vmatpush2.msra.mxu1 %v2470_v32  ;;  %v2446_v29 = vpop.permute.xlu1 %2445 }
 0xc4e   : > { %2587 = vmatpush2.msra.mxu0 %v2469_v57  ;;  %2659 = vmatprep.subr.mxu1 %v3660_v4  ;;  %v2449_v15 = vsel %vm1858_vm10, %v2446_v29, %v4726_v61  ;;  %v2450_v59 = vsel %vm1858_vm10, %v4775_v7, %v2446_v29 }
 0xc4f   : > { %2588 = vmatprep.subr.mxu0 %v2458_v60  ;;  %2660 = vmatpush2.msra.mxu1 %v2460_v33 }
 0xc50   : > { %2589 = vmatpush2.msra.mxu0 %v2459_v30  ;;  %2661 = vmatprep.subr.mxu1 %v3660_v4 }
 0xc51   : > { %v2435_v9 = vpop.permute.xlu0 %2434  ;;  %2590 = vmatprep.subr.mxu0 %v2449_v15  ;;  %2662 = vmatpush2.msra.mxu1 %v2451_v39  ;;  %v2439_v19 = vpop.permute.xlu1 %2438 }
 0xc52   : > { %v2441_v46 = vsel %vm1848_vm11, %v2435_v9, %v2437_v14  ;;  %v2442_v16 = vsel %vm1848_vm11, %v2439_v19, %v2435_v9  ;;  %2591 = vmatpush2.msra.mxu0 %v2450_v59  ;;  %2663 = vmatprep.subr.mxu1 %v3660_v4  ;;  %v2440_v61 = vsel %vm1848_vm11, %v2437_v14, %v2439_v19 }
 0xc53   : > { %2592 = vmatprep.subr.mxu0 %v2440_v61  ;;  %2664 = vmatpush2.msra.mxu1 %v2442_v16 }
 0xc54   : > { %2593 = vmatpush2.msra.mxu0 %v2441_v46  ;;  %2666 = vmatmul.mubr.f32.vlgmr.msra.gmra.mxu1 %v4672_v43 }
 0xc55   : > { %2595 = vmatmul.mubr.f32.vlgmr.msra.gmra.mxu0 %v4672_v43 }
 0xc5e   : > { %v2524_v7 = vpop.permute.xlu1 %2523 }
 0xd14   : > { %v2667_v34 = vpop.f32.mrf.mxu1 }
 0xd15   : > { %v2668_v35 = vadd.f32 %v2667_v34, %v2524_v7  ;;  %v2596_v6 = vpop.f32.mrf.mxu0 }
 0xd16   : > { %v2669_v4 = vpop.f32.mrf.mxu1  ;;  %v2597_v36 = vadd.f32 %v2596_v6, %v2524_v7 }
 0xd17   : > { %2676 = vst [vmem:[%s840_s15 + $0x8] sm:$0x7] %v2668_v35  ;;  %v2598_v13 = vpop.f32.mrf.mxu0 }
 0xd18   : > { %v2599_v41 = vadd.f32 %v2598_v13, %v2524_v7 }
 0xd1a   : > { %v2673_v17 = vcombine.low %v2597_v36, %v2599_v41 }
 0xd1c   : > { %2675 = vst [vmem:[%s840_s15] sm:$0x77] %v2673_v17 }
 0xd1d PF: > { %s39_s3 = sadd.s32 1, %s3642_s3  }
 0xd1e   : > { %p36_p6 = scmp.ge.s32.totalorder %s39_s3, 4  }
 0xd20   :  { %38 = sbr.rel (!%p36_p6) target bundleno = 27 (0x1b), region = 187 }
 0xd25   :  { %2698 = vsyncpa [#allocation3], 1 }
 0xd26   :  { %2700 = vsyncpa [#allocation3 + $0x1], 1 }
 0xd27   :  { %2701 = vsyncpa [#allocation5], 1 }
 0xd28   :  { %2702 = vsyncpa [#allocation8], 1 }
 0xd29   :  { %2703 = vsyncpa [#allocation11], 1 }
 0xd2a   :  { %2704 = vsyncpa [#allocation14], 1 }
 0xd2b   :  { %2705 = vsyncpa [#allocation17], 1 }
 0xd2c   :  { %2706 = vsyncpa [#allocation20], 1 }

</bundles_post_ra>
